<compile_context>
chip_gen: v7x
topology: tpu7x:2x2x1
jax: 0.10.0
libtpu: 0.0.40
codegen_flags: <defaults>
</compile_context>

<pallas_src>
import math
from functools import partial

import jax
import jax.numpy as jnp
from jax.experimental import pallas as pl
from jax.experimental.pallas import tpu as pltpu

# --- synthetic "BERT" config (small, deterministic; StanceModel only consumes
#     last_hidden_state, so a 2-layer encoder stands in for bert_model) ---
VOCAB = 50
HIDDEN = 32
N_HEADS = 2
HEAD_DIM = HIDDEN // N_HEADS
INTERMEDIATE = 64
N_LAYERS = 2
N_CLASSES = 3
MAX_POS = 16
LN_EPS = 1e-12

# packed small-param row indices
R_BQKV, R_BO, R_LN1G, R_LN1B, R_B1, R_B2, R_LN2G, R_LN2B = range(8)
G_EMB_LNG, G_EMB_LNB, G_CLS_B = range(3)
SMALL_W = 3 * HIDDEN  # widest packed row (fused qkv bias = 96)


def _vmem_spec():
    return pl.BlockSpec(memory_space=pltpu.MemorySpace.VMEM)


def _smem_spec():
    return pl.BlockSpec(memory_space=pltpu.MemorySpace.SMEM)


# ---------------- in-kernel helpers (traced inside the Pallas body) ----------------

def _layernorm(x, gamma, beta, eps=LN_EPS):
    """Two-pass LayerNorm (mean, then variance of centered values) for parity."""
    mean = jnp.mean(x, axis=-1, keepdims=True)
    d = x - mean
    var = jnp.mean(d * d, axis=-1, keepdims=True)
    return d * jax.lax.rsqrt(var + eps) * gamma + beta


# ---------------- fused Pallas kernel ----------------

def fused_stance_kernel(ids_ref, mask_ref, tok_emb_ref, pos_ref, glob_ref,
                        lsm_ref, wqkv_ref, wo_ref, w1_ref, w2_ref, cls_w_ref,
                        out_ref, x_buf, *, pooling):
    """Entire StanceModel forward (eval mode) in one kernel invocation.

    ids_ref:   (B,S) int32 in SMEM (token ids for the in-kernel embedding gather).
    tok_emb_ref: (VOCAB,1,H) token table; dynamic index on the leading (non-tiled) dim.
    pos_ref:   (S,H) = position embedding + segment-0 embedding (pre-summed).
    glob_ref:  (3,H) packed [emb_ln_g, emb_ln_b, cls_b(padded)].
    lsm_ref:   (L,8,3H) packed per-layer small params (biases + LN gains/shifts).
    wqkv_ref:  (L,H,3H) fused Q|K|V weights;  wo_ref: (L,NH,HEAD_DIM,H) per-head Wo.
    out_ref:   (2,B,3): row 0 = logits, row 1 = probabilities.
    """
    B, S, H = x_buf.shape
    BS = B * S

    # --- fused embedding gather: one token-row copy per (b,s), fully unrolled ---
    for b in range(B):
        for s in range(S):
            idx = ids_ref[b, s]
            x_buf[b, s, :] = tok_emb_ref[idx, 0, :]

    x = x_buf[...] + pos_ref[...][None, :, :]
    # Embedding LayerNorm (BERT-internal dropout is identity in eval mode).
    x = _layernorm(x, glob_ref[G_EMB_LNG, :], glob_ref[G_EMB_LNB, :])

    mask = mask_ref[...]                                  # (B,S) 1.0 keep / 0.0 pad
    key_bias = (1.0 - mask)[:, None, :] * (-1e9)          # (B,1,S) additive key mask
    scale = 1.0 / math.sqrt(HEAD_DIM)

    for l in range(N_LAYERS):
        # --- self-attention: one fused QKV matmul, per-head loop, no concats ---
        x2 = x.reshape(BS, H)                              # leading-dim merge: no copy
        qkv = (jnp.dot(x2, wqkv_ref[l], preferred_element_type=jnp.float32)
               + lsm_ref[l, R_BQKV, :]).reshape(B, S, 3 * H)

        attn2 = None
        for h in range(N_HEADS):
            q_h = qkv[:, :, h * HEAD_DIM:(h + 1) * HEAD_DIM]
            k_h = qkv[:, :, H + h * HEAD_DIM:H + (h + 1) * HEAD_DIM]
            v_h = qkv[:, :, 2 * H + h * HEAD_DIM:2 * H + (h + 1) * HEAD_DIM]

            s_h = jnp.einsum('bqd,bkd->bqk', q_h, k_h,
                             preferred_element_type=jnp.float32) * scale + key_bias
            m_h = jnp.max(s_h, axis=-1, keepdims=True)
            p_h = jnp.exp(s_h - m_h)
            p_h = p_h / jnp.sum(p_h, axis=-1, keepdims=True)   # exact softmax
            c_h = jnp.einsum('bqk,bkd->bqd', p_h, v_h,
                             preferred_element_type=jnp.float32)    # (B,S,dH)
            # per-head slice of Wo pre-baked in the weight layout -> no ctx concat
            proj = jnp.dot(c_h.reshape(BS, HEAD_DIM), wo_ref[l, h],
                           preferred_element_type=jnp.float32)      # (BS,H)
            attn2 = proj if attn2 is None else attn2 + proj

        attn = (attn2 + lsm_ref[l, R_BO, :H]).reshape(B, S, H)
        x1 = _layernorm(x + attn, lsm_ref[l, R_LN1G, :H], lsm_ref[l, R_LN1B, :H])

        # --- feed-forward ---
        h1 = (jnp.dot(x1.reshape(BS, H), w1_ref[l], preferred_element_type=jnp.float32)
              + lsm_ref[l, R_B1, :INTERMEDIATE])
        h1 = jax.nn.gelu(h1, approximate=True)
        ff = (jnp.dot(h1, w2_ref[l], preferred_element_type=jnp.float32)
              + lsm_ref[l, R_B2, :H]).reshape(B, S, H)
        x = _layernorm(x1 + ff, lsm_ref[l, R_LN2G, :H], lsm_ref[l, R_LN2B, :H])

    # --- StanceModel head ---
    if pooling == 'cls':
        pooled = x[:, 0, :]                                # last_hidden_state[:, 0]
    else:  # 'mean': torch.mean(last_hidden * mask.unsqueeze(-1), dim=1)
        pooled = jnp.mean(x * mask[:, :, None], axis=1)
    # self.dropout(p=0.1) is identity in eval mode.
    logits = (jnp.dot(pooled, cls_w_ref[...], preferred_element_type=jnp.float32)
              + glob_ref[G_CLS_B, :N_CLASSES])
    m = jnp.max(logits, axis=-1, keepdims=True)
    e = jnp.exp(logits - m)
    probs = e / jnp.sum(e, axis=-1, keepdims=True)

    out_ref[0] = logits                                    # single merged output
    out_ref[1] = probs


# ---------------- parameters & packing ----------------

def init_params(key):
    ks = iter(jax.random.split(key, 64))

    def norm(shape, scale=0.02):
        return scale * jax.random.normal(next(ks), shape, jnp.float32)

    def ones(shape): return jnp.ones(shape, jnp.float32)
    def zeros(shape): return jnp.zeros(shape, jnp.float32)

    params = {
        'tok_emb': norm((VOCAB, HIDDEN)),
        'pos_emb': norm((MAX_POS, HIDDEN)),
        'type_emb': norm((2, HIDDEN)),
        'emb_ln_g': ones((HIDDEN,)), 'emb_ln_b': zeros((HIDDEN,)),
        'cls_w': norm((HIDDEN, N_CLASSES)),     # nn.Linear(hidden, 3), pre-transposed
        'cls_b': zeros((N_CLASSES,)),
        'layers': [],
    }
    for _ in range(N_LAYERS):
        params['layers'].append({
            'wq': norm((HIDDEN, HIDDEN)), 'bq': zeros((HIDDEN,)),
            'wk': norm((HIDDEN, HIDDEN)), 'bk': zeros((HIDDEN,)),
            'wv': norm((HIDDEN, HIDDEN)), 'bv': zeros((HIDDEN,)),
            'wo': norm((HIDDEN, HIDDEN)), 'bo': zeros((HIDDEN,)),
            'ln1_g': ones((HIDDEN,)), 'ln1_b': zeros((HIDDEN,)),
            'w1': norm((HIDDEN, INTERMEDIATE)), 'b1': zeros((INTERMEDIATE,)),
            'w2': norm((INTERMEDIATE, HIDDEN)), 'b2': zeros((HIDDEN,)),
            'ln2_g': ones((HIDDEN,)), 'ln2_b': zeros((HIDDEN,)),
        })
    return params


def prepare_inference_params(params):
    """Pack params for the fused kernel (all f32; MXU is latency-bound here so bf16
    buys nothing and f32 keeps parity with the PyTorch reference):
      * Q/K/V weights fused into (L,H,3H) and their biases into one packed row.
      * Wo pre-split per head: (L, NH, HEAD_DIM, H)  -> no in-kernel ctx concat.
      * All small per-layer f32 params packed into one (L,8,3H) array; globals
        (emb LN + classifier bias) into one (3,H) array.
      * pos + segment-0 embeddings pre-summed; token table reshaped (VOCAB,1,H) so
        the in-kernel gather indexes a non-tiled leading dim."""
    def pad_row(v, width):
        v = jnp.asarray(v, jnp.float32).reshape(-1)
        return jnp.pad(v, (0, width - v.shape[0]))

    wqkv, wo, w1, w2, small = [], [], [], [], []
    for lyr in params['layers']:
        wqkv.append(jnp.concatenate([lyr['wq'], lyr['wk'], lyr['wv']], axis=1))
        wo.append(lyr['wo'].reshape(N_HEADS, HEAD_DIM, HIDDEN))
        w1.append(lyr['w1'])
        w2.append(lyr['w2'])
        bqkv = jnp.concatenate([lyr['bq'], lyr['bk'], lyr['bv']])
        rows = [None] * 8
        rows[R_BQKV] = pad_row(bqkv, SMALL_W)
        rows[R_BO] = pad_row(lyr['bo'], SMALL_W)
        rows[R_LN1G] = pad_row(lyr['ln1_g'], SMALL_W)
        rows[R_LN1B] = pad_row(lyr['ln1_b'], SMALL_W)
        rows[R_B1] = pad_row(lyr['b1'], SMALL_W)
        rows[R_B2] = pad_row(lyr['b2'], SMALL_W)
        rows[R_LN2G] = pad_row(lyr['ln2_g'], SMALL_W)
        rows[R_LN2B] = pad_row(lyr['ln2_b'], SMALL_W)
        small.append(jnp.stack(rows))

    glob = jnp.stack([pad_row(params['emb_ln_g'], HIDDEN),
                      pad_row(params['emb_ln_b'], HIDDEN),
                      pad_row(params['cls_b'], HIDDEN)])

    return {
        'tok_emb': params['tok_emb'].reshape(VOCAB, 1, HIDDEN).astype(jnp.float32),
        'pos_type': (params['pos_emb'] + params['type_emb'][0][None, :]).astype(jnp.float32),
        'glob': glob,
        'layer_small': jnp.stack(small),
        'wqkv': jnp.stack(wqkv).astype(jnp.float32),
        'wo': jnp.stack(wo).astype(jnp.float32),
        'w1': jnp.stack(w1).astype(jnp.float32),
        'w2': jnp.stack(w2).astype(jnp.float32),
        'cls_w': params['cls_w'].astype(jnp.float32),
    }


# ---------------- forward ----------------

def stance_model_forward(p, input_ids, attention_mask, pooling='cls'):
    """Eval-mode StanceModel.forward: returns (logits, probabilities).
    `p` is the output of prepare_inference_params(). Everything — embedding gather,
    encoder layers, pooling, classifier, softmax — runs in ONE pallas_call."""
    B, S = input_ids.shape

    args = (input_ids.astype(jnp.int32),
            attention_mask.astype(jnp.float32),
            p['tok_emb'], p['pos_type'][:S], p['glob'], p['layer_small'],
            p['wqkv'], p['wo'], p['w1'], p['w2'], p['cls_w'])

    # TODO(synk): at larger batch add grid=(num_batch_blocks,) with block (blk_B,S,H),
    # dimension_semantics=("parallel",) (v7x 2nd TensorCore) and, when the stacked
    # weights approach the 64 MiB v7x VMEM limit, switch to a layer-streaming grid
    # axis ("arbitrary", pl.Buffered(2)); at B=2 the gridless fused call is fastest.
    out = pl.pallas_call(
        partial(fused_stance_kernel, pooling=pooling),
        out_shape=jax.ShapeDtypeStruct((2, B, N_CLASSES), jnp.float32),
        in_specs=[_smem_spec()] + [_vmem_spec()] * (len(args) - 1),
        out_specs=_vmem_spec(),
        scratch_shapes=[pltpu.VMEM((B, S, HIDDEN), jnp.float32)],
    )(*args)

    logits, probs = out[0], out[1]
    return logits, probs


if __name__ == "__main__":
    key = jax.random.PRNGKey(0)
    k_ids, k_params = jax.random.split(key)

    B, S = 2, 8
    input_ids = jax.random.randint(k_ids, (B, S), 0, VOCAB, dtype=jnp.int32)
    lengths = jnp.array([S, S - 3], dtype=jnp.int32)
    attention_mask = (jnp.arange(S)[None, :] < lengths[:, None]).astype(jnp.int32)

    params = init_params(k_params)
    prepped = prepare_inference_params(params)

    fwd = jax.jit(partial(stance_model_forward, pooling='cls'))
    logits, probs = fwd(prepped, input_ids, attention_mask)
    jax.block_until_ready((logits, probs))

    assert logits.shape == (B, N_CLASSES) and probs.shape == (B, N_CLASSES)
    assert bool(jnp.all(jnp.isfinite(logits))) and bool(jnp.all(jnp.isfinite(probs)))
    assert bool(jnp.allclose(jnp.sum(probs, axis=-1), 1.0, atol=1e-5))
    print("KERNEL_OK")
</pallas_src>

<mosaic_0001>
module attributes {stable_mosaic.version = 11 : i64} {
  func.func @fused_stance_kernel(%arg0: memref<2x8xi32, #tpu.memory_space<smem>>, %arg1: memref<2x8xf32, #tpu.memory_space<vmem>>, %arg2: memref<50x1x32xf32, #tpu.memory_space<vmem>>, %arg3: memref<8x32xf32, #tpu.memory_space<vmem>>, %arg4: memref<3x32xf32, #tpu.memory_space<vmem>>, %arg5: memref<2x8x96xf32, #tpu.memory_space<vmem>>, %arg6: memref<2x32x96xf32, #tpu.memory_space<vmem>>, %arg7: memref<2x2x16x32xf32, #tpu.memory_space<vmem>>, %arg8: memref<2x32x64xf32, #tpu.memory_space<vmem>>, %arg9: memref<2x64x32xf32, #tpu.memory_space<vmem>>, %arg10: memref<32x3xf32, #tpu.memory_space<vmem>>, %arg11: memref<2x2x3xf32, #tpu.memory_space<vmem>>, %arg12: memref<2x8x32xf32, #tpu.memory_space<vmem>>) attributes {dimension_semantics = [], scalar_prefetch = 0 : i64, scratch_operands = 1 : i64, tpu.core_type = #tpu.core_type<tc>} {
    %c0 = arith.constant 0 : index
    %c0_0 = arith.constant 0 : index
    %0 = memref.load %arg0[%c0, %c0_0] : memref<2x8xi32, #tpu.memory_space<smem>>
    %1 = arith.index_cast %0 : i32 to index
    %c0_1 = arith.constant 0 : index
    %c0_2 = arith.constant 0 : index
    %2 = vector.load %arg2[%1, %c0_1, %c0_2] : memref<50x1x32xf32, #tpu.memory_space<vmem>>, vector<1x1x32xf32>
    %3 = vector.shape_cast %2 : vector<1x1x32xf32> to vector<32xf32>
    %c0_3 = arith.constant 0 : index
    %c0_4 = arith.constant 0 : index
    %c0_5 = arith.constant 0 : index
    %4 = vector.load %arg12[%c0_3, %c0_4, %c0_5] : memref<2x8x32xf32, #tpu.memory_space<vmem>>, vector<1x1x32xf32>
    %5 = vector.shape_cast %4 : vector<1x1x32xf32> to vector<32xf32>
    %6 = vector.shape_cast %3 : vector<32xf32> to vector<1x1x32xf32>
    tpu.vector_store %arg12[%c0_3, %c0_4, %c0_5], %6 {strides = array<i32>} : memref<2x8x32xf32, #tpu.memory_space<vmem>>, vector<1x1x32xf32>,
    %c0_6 = arith.constant 0 : index
    %c1 = arith.constant 1 : index
    %7 = memref.load %arg0[%c0_6, %c1] : memref<2x8xi32, #tpu.memory_space<smem>>
    %8 = arith.index_cast %7 : i32 to index
    %c0_7 = arith.constant 0 : index
    %c0_8 = arith.constant 0 : index
    %9 = vector.load %arg2[%8, %c0_7, %c0_8] : memref<50x1x32xf32, #tpu.memory_space<vmem>>, vector<1x1x32xf32>
    %10 = vector.shape_cast %9 : vector<1x1x32xf32> to vector<32xf32>
    %c0_9 = arith.constant 0 : index
    %c1_10 = arith.constant 1 : index
    %c0_11 = arith.constant 0 : index
    %11 = vector.load %arg12[%c0_9, %c1_10, %c0_11] : memref<2x8x32xf32, #tpu.memory_space<vmem>>, vector<1x1x32xf32>
    %12 = vector.shape_cast %11 : vector<1x1x32xf32> to vector<32xf32>
    %13 = vector.shape_cast %10 : vector<32xf32> to vector<1x1x32xf32>
    tpu.vector_store %arg12[%c0_9, %c1_10, %c0_11], %13 {strides = array<i32>} : memref<2x8x32xf32, #tpu.memory_space<vmem>>, vector<1x1x32xf32>,
    %c0_12 = arith.constant 0 : index
    %c2 = arith.constant 2 : index
    %14 = memref.load %arg0[%c0_12, %c2] : memref<2x8xi32, #tpu.memory_space<smem>>
    %15 = arith.index_cast %14 : i32 to index
    %c0_13 = arith.constant 0 : index
    %c0_14 = arith.constant 0 : index
    %16 = vector.load %arg2[%15, %c0_13, %c0_14] : memref<50x1x32xf32, #tpu.memory_space<vmem>>, vector<1x1x32xf32>
    %17 = vector.shape_cast %16 : vector<1x1x32xf32> to vector<32xf32>
    %c0_15 = arith.constant 0 : index
    %c2_16 = arith.constant 2 : index
    %c0_17 = arith.constant 0 : index
    %18 = vector.load %arg12[%c0_15, %c2_16, %c0_17] : memref<2x8x32xf32, #tpu.memory_space<vmem>>, vector<1x1x32xf32>
    %19 = vector.shape_cast %18 : vector<1x1x32xf32> to vector<32xf32>
    %20 = vector.shape_cast %17 : vector<32xf32> to vector<1x1x32xf32>
    tpu.vector_store %arg12[%c0_15, %c2_16, %c0_17], %20 {strides = array<i32>} : memref<2x8x32xf32, #tpu.memory_space<vmem>>, vector<1x1x32xf32>,
    %c0_18 = arith.constant 0 : index
    %c3 = arith.constant 3 : index
    %21 = memref.load %arg0[%c0_18, %c3] : memref<2x8xi32, #tpu.memory_space<smem>>
    %22 = arith.index_cast %21 : i32 to index
    %c0_19 = arith.constant 0 : index
    %c0_20 = arith.constant 0 : index
    %23 = vector.load %arg2[%22, %c0_19, %c0_20] : memref<50x1x32xf32, #tpu.memory_space<vmem>>, vector<1x1x32xf32>
    %24 = vector.shape_cast %23 : vector<1x1x32xf32> to vector<32xf32>
    %c0_21 = arith.constant 0 : index
    %c3_22 = arith.constant 3 : index
    %c0_23 = arith.constant 0 : index
    %25 = vector.load %arg12[%c0_21, %c3_22, %c0_23] : memref<2x8x32xf32, #tpu.memory_space<vmem>>, vector<1x1x32xf32>
    %26 = vector.shape_cast %25 : vector<1x1x32xf32> to vector<32xf32>
    %27 = vector.shape_cast %24 : vector<32xf32> to vector<1x1x32xf32>
    tpu.vector_store %arg12[%c0_21, %c3_22, %c0_23], %27 {strides = array<i32>} : memref<2x8x32xf32, #tpu.memory_space<vmem>>, vector<1x1x32xf32>,
    %c0_24 = arith.constant 0 : index
    %c4 = arith.constant 4 : index
    %28 = memref.load %arg0[%c0_24, %c4] : memref<2x8xi32, #tpu.memory_space<smem>>
    %29 = arith.index_cast %28 : i32 to index
    %c0_25 = arith.constant 0 : index
    %c0_26 = arith.constant 0 : index
    %30 = vector.load %arg2[%29, %c0_25, %c0_26] : memref<50x1x32xf32, #tpu.memory_space<vmem>>, vector<1x1x32xf32>
    %31 = vector.shape_cast %30 : vector<1x1x32xf32> to vector<32xf32>
    %c0_27 = arith.constant 0 : index
    %c4_28 = arith.constant 4 : index
    %c0_29 = arith.constant 0 : index
    %32 = vector.load %arg12[%c0_27, %c4_28, %c0_29] : memref<2x8x32xf32, #tpu.memory_space<vmem>>, vector<1x1x32xf32>
    %33 = vector.shape_cast %32 : vector<1x1x32xf32> to vector<32xf32>
    %34 = vector.shape_cast %31 : vector<32xf32> to vector<1x1x32xf32>
    tpu.vector_store %arg12[%c0_27, %c4_28, %c0_29], %34 {strides = array<i32>} : memref<2x8x32xf32, #tpu.memory_space<vmem>>, vector<1x1x32xf32>,
    %c0_30 = arith.constant 0 : index
    %c5 = arith.constant 5 : index
    %35 = memref.load %arg0[%c0_30, %c5] : memref<2x8xi32, #tpu.memory_space<smem>>
    %36 = arith.index_cast %35 : i32 to index
    %c0_31 = arith.constant 0 : index
    %c0_32 = arith.constant 0 : index
    %37 = vector.load %arg2[%36, %c0_31, %c0_32] : memref<50x1x32xf32, #tpu.memory_space<vmem>>, vector<1x1x32xf32>
    %38 = vector.shape_cast %37 : vector<1x1x32xf32> to vector<32xf32>
    %c0_33 = arith.constant 0 : index
    %c5_34 = arith.constant 5 : index
    %c0_35 = arith.constant 0 : index
    %39 = vector.load %arg12[%c0_33, %c5_34, %c0_35] : memref<2x8x32xf32, #tpu.memory_space<vmem>>, vector<1x1x32xf32>
    %40 = vector.shape_cast %39 : vector<1x1x32xf32> to vector<32xf32>
    %41 = vector.shape_cast %38 : vector<32xf32> to vector<1x1x32xf32>
    tpu.vector_store %arg12[%c0_33, %c5_34, %c0_35], %41 {strides = array<i32>} : memref<2x8x32xf32, #tpu.memory_space<vmem>>, vector<1x1x32xf32>,
    %c0_36 = arith.constant 0 : index
    %c6 = arith.constant 6 : index
    %42 = memref.load %arg0[%c0_36, %c6] : memref<2x8xi32, #tpu.memory_space<smem>>
    %43 = arith.index_cast %42 : i32 to index
    %c0_37 = arith.constant 0 : index
    %c0_38 = arith.constant 0 : index
    %44 = vector.load %arg2[%43, %c0_37, %c0_38] : memref<50x1x32xf32, #tpu.memory_space<vmem>>, vector<1x1x32xf32>
    %45 = vector.shape_cast %44 : vector<1x1x32xf32> to vector<32xf32>
    %c0_39 = arith.constant 0 : index
    %c6_40 = arith.constant 6 : index
    %c0_41 = arith.constant 0 : index
    %46 = vector.load %arg12[%c0_39, %c6_40, %c0_41] : memref<2x8x32xf32, #tpu.memory_space<vmem>>, vector<1x1x32xf32>
    %47 = vector.shape_cast %46 : vector<1x1x32xf32> to vector<32xf32>
    %48 = vector.shape_cast %45 : vector<32xf32> to vector<1x1x32xf32>
    tpu.vector_store %arg12[%c0_39, %c6_40, %c0_41], %48 {strides = array<i32>} : memref<2x8x32xf32, #tpu.memory_space<vmem>>, vector<1x1x32xf32>,
    %c0_42 = arith.constant 0 : index
    %c7 = arith.constant 7 : index
    %49 = memref.load %arg0[%c0_42, %c7] : memref<2x8xi32, #tpu.memory_space<smem>>
    %50 = arith.index_cast %49 : i32 to index
    %c0_43 = arith.constant 0 : index
    %c0_44 = arith.constant 0 : index
    %51 = vector.load %arg2[%50, %c0_43, %c0_44] : memref<50x1x32xf32, #tpu.memory_space<vmem>>, vector<1x1x32xf32>
    %52 = vector.shape_cast %51 : vector<1x1x32xf32> to vector<32xf32>
    %c0_45 = arith.constant 0 : index
    %c7_46 = arith.constant 7 : index
    %c0_47 = arith.constant 0 : index
    %53 = vector.load %arg12[%c0_45, %c7_46, %c0_47] : memref<2x8x32xf32, #tpu.memory_space<vmem>>, vector<1x1x32xf32>
    %54 = vector.shape_cast %53 : vector<1x1x32xf32> to vector<32xf32>
    %55 = vector.shape_cast %52 : vector<32xf32> to vector<1x1x32xf32>
    tpu.vector_store %arg12[%c0_45, %c7_46, %c0_47], %55 {strides = array<i32>} : memref<2x8x32xf32, #tpu.memory_space<vmem>>, vector<1x1x32xf32>,
    %c1_48 = arith.constant 1 : index
    %c0_49 = arith.constant 0 : index
    %56 = memref.load %arg0[%c1_48, %c0_49] : memref<2x8xi32, #tpu.memory_space<smem>>
    %57 = arith.index_cast %56 : i32 to index
    %c0_50 = arith.constant 0 : index
    %c0_51 = arith.constant 0 : index
    %58 = vector.load %arg2[%57, %c0_50, %c0_51] : memref<50x1x32xf32, #tpu.memory_space<vmem>>, vector<1x1x32xf32>
    %59 = vector.shape_cast %58 : vector<1x1x32xf32> to vector<32xf32>
    %c1_52 = arith.constant 1 : index
    %c0_53 = arith.constant 0 : index
    %c0_54 = arith.constant 0 : index
    %60 = vector.load %arg12[%c1_52, %c0_53, %c0_54] : memref<2x8x32xf32, #tpu.memory_space<vmem>>, vector<1x1x32xf32>
    %61 = vector.shape_cast %60 : vector<1x1x32xf32> to vector<32xf32>
    %62 = vector.shape_cast %59 : vector<32xf32> to vector<1x1x32xf32>
    tpu.vector_store %arg12[%c1_52, %c0_53, %c0_54], %62 {strides = array<i32>} : memref<2x8x32xf32, #tpu.memory_space<vmem>>, vector<1x1x32xf32>,
    %c1_55 = arith.constant 1 : index
    %c1_56 = arith.constant 1 : index
    %63 = memref.load %arg0[%c1_55, %c1_56] : memref<2x8xi32, #tpu.memory_space<smem>>
    %64 = arith.index_cast %63 : i32 to index
    %c0_57 = arith.constant 0 : index
    %c0_58 = arith.constant 0 : index
    %65 = vector.load %arg2[%64, %c0_57, %c0_58] : memref<50x1x32xf32, #tpu.memory_space<vmem>>, vector<1x1x32xf32>
    %66 = vector.shape_cast %65 : vector<1x1x32xf32> to vector<32xf32>
    %c1_59 = arith.constant 1 : index
    %c1_60 = arith.constant 1 : index
    %c0_61 = arith.constant 0 : index
    %67 = vector.load %arg12[%c1_59, %c1_60, %c0_61] : memref<2x8x32xf32, #tpu.memory_space<vmem>>, vector<1x1x32xf32>
    %68 = vector.shape_cast %67 : vector<1x1x32xf32> to vector<32xf32>
    %69 = vector.shape_cast %66 : vector<32xf32> to vector<1x1x32xf32>
    tpu.vector_store %arg12[%c1_59, %c1_60, %c0_61], %69 {strides = array<i32>} : memref<2x8x32xf32, #tpu.memory_space<vmem>>, vector<1x1x32xf32>,
    %c1_62 = arith.constant 1 : index
    %c2_63 = arith.constant 2 : index
    %70 = memref.load %arg0[%c1_62, %c2_63] : memref<2x8xi32, #tpu.memory_space<smem>>
    %71 = arith.index_cast %70 : i32 to index
    %c0_64 = arith.constant 0 : index
    %c0_65 = arith.constant 0 : index
    %72 = vector.load %arg2[%71, %c0_64, %c0_65] : memref<50x1x32xf32, #tpu.memory_space<vmem>>, vector<1x1x32xf32>
    %73 = vector.shape_cast %72 : vector<1x1x32xf32> to vector<32xf32>
    %c1_66 = arith.constant 1 : index
    %c2_67 = arith.constant 2 : index
    %c0_68 = arith.constant 0 : index
    %74 = vector.load %arg12[%c1_66, %c2_67, %c0_68] : memref<2x8x32xf32, #tpu.memory_space<vmem>>, vector<1x1x32xf32>
    %75 = vector.shape_cast %74 : vector<1x1x32xf32> to vector<32xf32>
    %76 = vector.shape_cast %73 : vector<32xf32> to vector<1x1x32xf32>
    tpu.vector_store %arg12[%c1_66, %c2_67, %c0_68], %76 {strides = array<i32>} : memref<2x8x32xf32, #tpu.memory_space<vmem>>, vector<1x1x32xf32>,
    %c1_69 = arith.constant 1 : index
    %c3_70 = arith.constant 3 : index
    %77 = memref.load %arg0[%c1_69, %c3_70] : memref<2x8xi32, #tpu.memory_space<smem>>
    %78 = arith.index_cast %77 : i32 to index
    %c0_71 = arith.constant 0 : index
    %c0_72 = arith.constant 0 : index
    %79 = vector.load %arg2[%78, %c0_71, %c0_72] : memref<50x1x32xf32, #tpu.memory_space<vmem>>, vector<1x1x32xf32>
    %80 = vector.shape_cast %79 : vector<1x1x32xf32> to vector<32xf32>
    %c1_73 = arith.constant 1 : index
    %c3_74 = arith.constant 3 : index
    %c0_75 = arith.constant 0 : index
    %81 = vector.load %arg12[%c1_73, %c3_74, %c0_75] : memref<2x8x32xf32, #tpu.memory_space<vmem>>, vector<1x1x32xf32>
    %82 = vector.shape_cast %81 : vector<1x1x32xf32> to vector<32xf32>
    %83 = vector.shape_cast %80 : vector<32xf32> to vector<1x1x32xf32>
    tpu.vector_store %arg12[%c1_73, %c3_74, %c0_75], %83 {strides = array<i32>} : memref<2x8x32xf32, #tpu.memory_space<vmem>>, vector<1x1x32xf32>,
    %c1_76 = arith.constant 1 : index
    %c4_77 = arith.constant 4 : index
    %84 = memref.load %arg0[%c1_76, %c4_77] : memref<2x8xi32, #tpu.memory_space<smem>>
    %85 = arith.index_cast %84 : i32 to index
    %c0_78 = arith.constant 0 : index
    %c0_79 = arith.constant 0 : index
    %86 = vector.load %arg2[%85, %c0_78, %c0_79] : memref<50x1x32xf32, #tpu.memory_space<vmem>>, vector<1x1x32xf32>
    %87 = vector.shape_cast %86 : vector<1x1x32xf32> to vector<32xf32>
    %c1_80 = arith.constant 1 : index
    %c4_81 = arith.constant 4 : index
    %c0_82 = arith.constant 0 : index
    %88 = vector.load %arg12[%c1_80, %c4_81, %c0_82] : memref<2x8x32xf32, #tpu.memory_space<vmem>>, vector<1x1x32xf32>
    %89 = vector.shape_cast %88 : vector<1x1x32xf32> to vector<32xf32>
    %90 = vector.shape_cast %87 : vector<32xf32> to vector<1x1x32xf32>
    tpu.vector_store %arg12[%c1_80, %c4_81, %c0_82], %90 {strides = array<i32>} : memref<2x8x32xf32, #tpu.memory_space<vmem>>, vector<1x1x32xf32>,
    %c1_83 = arith.constant 1 : index
    %c5_84 = arith.constant 5 : index
    %91 = memref.load %arg0[%c1_83, %c5_84] : memref<2x8xi32, #tpu.memory_space<smem>>
    %92 = arith.index_cast %91 : i32 to index
    %c0_85 = arith.constant 0 : index
    %c0_86 = arith.constant 0 : index
    %93 = vector.load %arg2[%92, %c0_85, %c0_86] : memref<50x1x32xf32, #tpu.memory_space<vmem>>, vector<1x1x32xf32>
    %94 = vector.shape_cast %93 : vector<1x1x32xf32> to vector<32xf32>
    %c1_87 = arith.constant 1 : index
    %c5_88 = arith.constant 5 : index
    %c0_89 = arith.constant 0 : index
    %95 = vector.load %arg12[%c1_87, %c5_88, %c0_89] : memref<2x8x32xf32, #tpu.memory_space<vmem>>, vector<1x1x32xf32>
    %96 = vector.shape_cast %95 : vector<1x1x32xf32> to vector<32xf32>
    %97 = vector.shape_cast %94 : vector<32xf32> to vector<1x1x32xf32>
    tpu.vector_store %arg12[%c1_87, %c5_88, %c0_89], %97 {strides = array<i32>} : memref<2x8x32xf32, #tpu.memory_space<vmem>>, vector<1x1x32xf32>,
    %c1_90 = arith.constant 1 : index
    %c6_91 = arith.constant 6 : index
    %98 = memref.load %arg0[%c1_90, %c6_91] : memref<2x8xi32, #tpu.memory_space<smem>>
    %99 = arith.index_cast %98 : i32 to index
    %c0_92 = arith.constant 0 : index
    %c0_93 = arith.constant 0 : index
    %100 = vector.load %arg2[%99, %c0_92, %c0_93] : memref<50x1x32xf32, #tpu.memory_space<vmem>>, vector<1x1x32xf32>
    %101 = vector.shape_cast %100 : vector<1x1x32xf32> to vector<32xf32>
    %c1_94 = arith.constant 1 : index
    %c6_95 = arith.constant 6 : index
    %c0_96 = arith.constant 0 : index
    %102 = vector.load %arg12[%c1_94, %c6_95, %c0_96] : memref<2x8x32xf32, #tpu.memory_space<vmem>>, vector<1x1x32xf32>
    %103 = vector.shape_cast %102 : vector<1x1x32xf32> to vector<32xf32>
    %104 = vector.shape_cast %101 : vector<32xf32> to vector<1x1x32xf32>
    tpu.vector_store %arg12[%c1_94, %c6_95, %c0_96], %104 {strides = array<i32>} : memref<2x8x32xf32, #tpu.memory_space<vmem>>, vector<1x1x32xf32>,
    %c1_97 = arith.constant 1 : index
    %c7_98 = arith.constant 7 : index
    %105 = memref.load %arg0[%c1_97, %c7_98] : memref<2x8xi32, #tpu.memory_space<smem>>
    %106 = arith.index_cast %105 : i32 to index
    %c0_99 = arith.constant 0 : index
    %c0_100 = arith.constant 0 : index
    %107 = vector.load %arg2[%106, %c0_99, %c0_100] : memref<50x1x32xf32, #tpu.memory_space<vmem>>, vector<1x1x32xf32>
    %108 = vector.shape_cast %107 : vector<1x1x32xf32> to vector<32xf32>
    %c1_101 = arith.constant 1 : index
    %c7_102 = arith.constant 7 : index
    %c0_103 = arith.constant 0 : index
    %109 = vector.load %arg12[%c1_101, %c7_102, %c0_103] : memref<2x8x32xf32, #tpu.memory_space<vmem>>, vector<1x1x32xf32>
    %110 = vector.shape_cast %109 : vector<1x1x32xf32> to vector<32xf32>
    %111 = vector.shape_cast %108 : vector<32xf32> to vector<1x1x32xf32>
    tpu.vector_store %arg12[%c1_101, %c7_102, %c0_103], %111 {strides = array<i32>} : memref<2x8x32xf32, #tpu.memory_space<vmem>>, vector<1x1x32xf32>,
    %c0_104 = arith.constant 0 : index
    %c0_105 = arith.constant 0 : index
    %c0_106 = arith.constant 0 : index
    %112 = vector.load %arg12[%c0_104, %c0_105, %c0_106] : memref<2x8x32xf32, #tpu.memory_space<vmem>>, vector<2x8x32xf32>
    %c0_107 = arith.constant 0 : index
    %c0_108 = arith.constant 0 : index
    %113 = vector.load %arg3[%c0_107, %c0_108] : memref<8x32xf32, #tpu.memory_space<vmem>>, vector<8x32xf32>
    %114 = vector.shape_cast %113 : vector<8x32xf32> to vector<1x8x32xf32>
    %115 = vector.broadcast %114 : vector<1x8x32xf32> to vector<2x8x32xf32>
    %116 = arith.addf %112, %115 : vector<2x8x32xf32>
    %c0_109 = arith.constant 0 : index
    %c0_110 = arith.constant 0 : index
    %117 = vector.load %arg4[%c0_109, %c0_110] : memref<3x32xf32, #tpu.memory_space<vmem>>, vector<1x32xf32>
    %118 = vector.shape_cast %117 : vector<1x32xf32> to vector<32xf32>
    %c1_111 = arith.constant 1 : index
    %c0_112 = arith.constant 0 : index
    %119 = vector.load %arg4[%c1_111, %c0_112] : memref<3x32xf32, #tpu.memory_space<vmem>>, vector<1x32xf32>
    %120 = vector.shape_cast %119 : vector<1x32xf32> to vector<32xf32>
    %cst = arith.constant dense<0.000000e+00> : vector<2x8xf32>
    %121 = vector.multi_reduction <add>, %116, %cst [2] : vector<2x8x32xf32> to vector<2x8xf32>
    %122 = vector.shape_cast %121 : vector<2x8xf32> to vector<2x8x1xf32>
    %cst_113 = arith.constant 3.200000e+01 : f32
    %123 = vector.broadcast %cst_113 : f32 to vector<2x8x1xf32>
    %124 = arith.divf %122, %123 : vector<2x8x1xf32>
    %125 = vector.broadcast %124 : vector<2x8x1xf32> to vector<2x8x32xf32>
    %126 = arith.subf %116, %125 : vector<2x8x32xf32>
    %127 = arith.mulf %126, %126 : vector<2x8x32xf32>
    %cst_114 = arith.constant dense<0.000000e+00> : vector<2x8xf32>
    %128 = vector.multi_reduction <add>, %127, %cst_114 [2] : vector<2x8x32xf32> to vector<2x8xf32>
    %129 = vector.shape_cast %128 : vector<2x8xf32> to vector<2x8x1xf32>
    %cst_115 = arith.constant 3.200000e+01 : f32
    %130 = vector.broadcast %cst_115 : f32 to vector<2x8x1xf32>
    %131 = arith.divf %129, %130 : vector<2x8x1xf32>
    %cst_116 = arith.constant 9.99999996E-13 : f32
    %132 = vector.broadcast %cst_116 : f32 to vector<2x8x1xf32>
    %133 = arith.addf %131, %132 : vector<2x8x1xf32>
    %134 = math.rsqrt %133 : vector<2x8x1xf32>
    %135 = vector.broadcast %134 : vector<2x8x1xf32> to vector<2x8x32xf32>
    %136 = arith.mulf %126, %135 : vector<2x8x32xf32>
    %137 = vector.shape_cast %118 : vector<32xf32> to vector<1x1x32xf32>
    %138 = vector.broadcast %137 : vector<1x1x32xf32> to vector<2x8x32xf32>
    %139 = arith.mulf %136, %138 : vector<2x8x32xf32>
    %140 = vector.shape_cast %120 : vector<32xf32> to vector<1x1x32xf32>
    %141 = vector.broadcast %140 : vector<1x1x32xf32> to vector<2x8x32xf32>
    %142 = arith.addf %139, %141 : vector<2x8x32xf32>
    %c0_117 = arith.constant 0 : index
    %c0_118 = arith.constant 0 : index
    %143 = vector.load %arg1[%c0_117, %c0_118] : memref<2x8xf32, #tpu.memory_space<vmem>>, vector<2x8xf32>
    %cst_119 = arith.constant 1.000000e+00 : f32
    %144 = vector.broadcast %cst_119 : f32 to vector<2x8xf32>
    %145 = arith.subf %144, %143 : vector<2x8xf32>
    %146 = vector.shape_cast %145 : vector<2x8xf32> to vector<2x1x8xf32>
    %cst_120 = arith.constant -1.000000e+09 : f32
    %147 = vector.broadcast %cst_120 : f32 to vector<2x1x8xf32>
    %148 = arith.mulf %146, %147 : vector<2x1x8xf32>
    %149 = vector.shape_cast %142 : vector<2x8x32xf32> to vector<16x32xf32>
    %c0_121 = arith.constant 0 : index
    %c0_122 = arith.constant 0 : index
    %c0_123 = arith.constant 0 : index
    %150 = vector.load %arg6[%c0_121, %c0_122, %c0_123] : memref<2x32x96xf32, #tpu.memory_space<vmem>>, vector<1x32x96xf32>
    %151 = vector.shape_cast %150 : vector<1x32x96xf32> to vector<32x96xf32>
    %cst_124 = arith.constant dense<0.000000e+00> : vector<16x96xf32>
    %152 = tpu.matmul %149, %151, %cst_124 {dimension_numbers = #tpu.dot_dimension_numbers<[1], [0], [0], [1], [0, 0, 1, 1], [], []>} : vector<16x32xf32>, vector<32x96xf32>, vector<16x96xf32> -> vector<16x96xf32>
    %c0_125 = arith.constant 0 : index
    %c0_126 = arith.constant 0 : index
    %c0_127 = arith.constant 0 : index
    %153 = vector.load %arg5[%c0_125, %c0_126, %c0_127] : memref<2x8x96xf32, #tpu.memory_space<vmem>>, vector<1x1x96xf32>
    %154 = vector.shape_cast %153 : vector<1x1x96xf32> to vector<96xf32>
    %155 = vector.shape_cast %154 : vector<96xf32> to vector<1x96xf32>
    %156 = vector.broadcast %155 : vector<1x96xf32> to vector<16x96xf32>
    %157 = arith.addf %152, %156 : vector<16x96xf32>
    %158 = vector.shape_cast %157 : vector<16x96xf32> to vector<2x8x96xf32>
    %159 = vector.extract_strided_slice %158 {offsets = [0, 0, 0], sizes = [2, 8, 16], strides = [1, 1, 1]} : vector<2x8x96xf32> to vector<2x8x16xf32>
    %160 = vector.extract_strided_slice %158 {offsets = [0, 0, 32], sizes = [2, 8, 16], strides = [1, 1, 1]} : vector<2x8x96xf32> to vector<2x8x16xf32>
    %161 = vector.extract_strided_slice %158 {offsets = [0, 0, 64], sizes = [2, 8, 16], strides = [1, 1, 1]} : vector<2x8x96xf32> to vector<2x8x16xf32>
    "tpu.trace_start"() <{level = 10 : i32, message = "bqd,bkd->bqk"}> : () -> ()
    %cst_128 = arith.constant dense<0.000000e+00> : vector<2x8x8xf32>
    %162 = tpu.matmul %159, %160, %cst_128 {dimension_numbers = #tpu.dot_dimension_numbers<[2], [2], [1], [1], [0, 0, 0, 1, 1, 1], [0], [0]>} : vector<2x8x16xf32>, vector<2x8x16xf32>, vector<2x8x8xf32> -> vector<2x8x8xf32>
    "tpu.trace_stop"() : () -> ()
    %cst_129 = arith.constant 2.500000e-01 : f32
    %163 = vector.broadcast %cst_129 : f32 to vector<2x8x8xf32>
    %164 = arith.mulf %162, %163 : vector<2x8x8xf32>
    %165 = vector.broadcast %148 : vector<2x1x8xf32> to vector<2x8x8xf32>
    %166 = arith.addf %164, %165 : vector<2x8x8xf32>
    %cst_130 = arith.constant dense<0xFF800000> : vector<2x8xf32>
    %167 = vector.multi_reduction <maximumf>, %166, %cst_130 [2] : vector<2x8x8xf32> to vector<2x8xf32>
    %168 = vector.shape_cast %167 : vector<2x8xf32> to vector<2x8x1xf32>
    %169 = vector.broadcast %168 : vector<2x8x1xf32> to vector<2x8x8xf32>
    %170 = arith.subf %166, %169 : vector<2x8x8xf32>
    %171 = math.exp %170 : vector<2x8x8xf32>
    %cst_131 = arith.constant dense<0.000000e+00> : vector<2x8xf32>
    %172 = vector.multi_reduction <add>, %171, %cst_131 [2] : vector<2x8x8xf32> to vector<2x8xf32>
    %173 = vector.shape_cast %172 : vector<2x8xf32> to vector<2x8x1xf32>
    %174 = vector.broadcast %173 : vector<2x8x1xf32> to vector<2x8x8xf32>
    %175 = arith.divf %171, %174 : vector<2x8x8xf32>
    "tpu.trace_start"() <{level = 10 : i32, message = "bqk,bkd->bqd"}> : () -> ()
    %cst_132 = arith.constant dense<0.000000e+00> : vector<2x8x16xf32>
    %176 = tpu.matmul %175, %161, %cst_132 {dimension_numbers = #tpu.dot_dimension_numbers<[2], [1], [1], [2], [0, 0, 0, 1, 1, 2], [0], [0]>} : vector<2x8x8xf32>, vector<2x8x16xf32>, vector<2x8x16xf32> -> vector<2x8x16xf32>
    "tpu.trace_stop"() : () -> ()
    %177 = vector.shape_cast %176 : vector<2x8x16xf32> to vector<16x16xf32>
    %c0_133 = arith.constant 0 : index
    %c0_134 = arith.constant 0 : index
    %c0_135 = arith.constant 0 : index
    %c0_136 = arith.constant 0 : index
    %178 = vector.load %arg7[%c0_133, %c0_134, %c0_135, %c0_136] : memref<2x2x16x32xf32, #tpu.memory_space<vmem>>, vector<1x1x16x32xf32>
    %179 = vector.shape_cast %178 : vector<1x1x16x32xf32> to vector<16x32xf32>
    %cst_137 = arith.constant dense<0.000000e+00> : vector<16x32xf32>
    %180 = tpu.matmul %177, %179, %cst_137 {dimension_numbers = #tpu.dot_dimension_numbers<[1], [0], [0], [1], [0, 0, 1, 1], [], []>} : vector<16x16xf32>, vector<16x32xf32>, vector<16x32xf32> -> vector<16x32xf32>
    %181 = vector.extract_strided_slice %158 {offsets = [0, 0, 16], sizes = [2, 8, 16], strides = [1, 1, 1]} : vector<2x8x96xf32> to vector<2x8x16xf32>
    %182 = vector.extract_strided_slice %158 {offsets = [0, 0, 48], sizes = [2, 8, 16], strides = [1, 1, 1]} : vector<2x8x96xf32> to vector<2x8x16xf32>
    %183 = vector.extract_strided_slice %158 {offsets = [0, 0, 80], sizes = [2, 8, 16], strides = [1, 1, 1]} : vector<2x8x96xf32> to vector<2x8x16xf32>
    "tpu.trace_start"() <{level = 10 : i32, message = "bqd,bkd->bqk"}> : () -> ()
    %cst_138 = arith.constant dense<0.000000e+00> : vector<2x8x8xf32>
    %184 = tpu.matmul %181, %182, %cst_138 {dimension_numbers = #tpu.dot_dimension_numbers<[2], [2], [1], [1], [0, 0, 0, 1, 1, 1], [0], [0]>} : vector<2x8x16xf32>, vector<2x8x16xf32>, vector<2x8x8xf32> -> vector<2x8x8xf32>
    "tpu.trace_stop"() : () -> ()
    %cst_139 = arith.constant 2.500000e-01 : f32
    %185 = vector.broadcast %cst_139 : f32 to vector<2x8x8xf32>
    %186 = arith.mulf %184, %185 : vector<2x8x8xf32>
    %187 = vector.broadcast %148 : vector<2x1x8xf32> to vector<2x8x8xf32>
    %188 = arith.addf %186, %187 : vector<2x8x8xf32>
    %cst_140 = arith.constant dense<0xFF800000> : vector<2x8xf32>
    %189 = vector.multi_reduction <maximumf>, %188, %cst_140 [2] : vector<2x8x8xf32> to vector<2x8xf32>
    %190 = vector.shape_cast %189 : vector<2x8xf32> to vector<2x8x1xf32>
    %191 = vector.broadcast %190 : vector<2x8x1xf32> to vector<2x8x8xf32>
    %192 = arith.subf %188, %191 : vector<2x8x8xf32>
    %193 = math.exp %192 : vector<2x8x8xf32>
    %cst_141 = arith.constant dense<0.000000e+00> : vector<2x8xf32>
    %194 = vector.multi_reduction <add>, %193, %cst_141 [2] : vector<2x8x8xf32> to vector<2x8xf32>
    %195 = vector.shape_cast %194 : vector<2x8xf32> to vector<2x8x1xf32>
    %196 = vector.broadcast %195 : vector<2x8x1xf32> to vector<2x8x8xf32>
    %197 = arith.divf %193, %196 : vector<2x8x8xf32>
    "tpu.trace_start"() <{level = 10 : i32, message = "bqk,bkd->bqd"}> : () -> ()
    %cst_142 = arith.constant dense<0.000000e+00> : vector<2x8x16xf32>
    %198 = tpu.matmul %197, %183, %cst_142 {dimension_numbers = #tpu.dot_dimension_numbers<[2], [1], [1], [2], [0, 0, 0, 1, 1, 2], [0], [0]>} : vector<2x8x8xf32>, vector<2x8x16xf32>, vector<2x8x16xf32> -> vector<2x8x16xf32>
    "tpu.trace_stop"() : () -> ()
    %199 = vector.shape_cast %198 : vector<2x8x16xf32> to vector<16x16xf32>
    %c0_143 = arith.constant 0 : index
    %c1_144 = arith.constant 1 : index
    %c0_145 = arith.constant 0 : index
    %c0_146 = arith.constant 0 : index
    %200 = vector.load %arg7[%c0_143, %c1_144, %c0_145, %c0_146] : memref<2x2x16x32xf32, #tpu.memory_space<vmem>>, vector<1x1x16x32xf32>
    %201 = vector.shape_cast %200 : vector<1x1x16x32xf32> to vector<16x32xf32>
    %cst_147 = arith.constant dense<0.000000e+00> : vector<16x32xf32>
    %202 = tpu.matmul %199, %201, %cst_147 {dimension_numbers = #tpu.dot_dimension_numbers<[1], [0], [0], [1], [0, 0, 1, 1], [], []>} : vector<16x16xf32>, vector<16x32xf32>, vector<16x32xf32> -> vector<16x32xf32>
    %203 = arith.addf %180, %202 : vector<16x32xf32>
    %c0_148 = arith.constant 0 : index
    %c1_149 = arith.constant 1 : index
    %c0_150 = arith.constant 0 : index
    %204 = vector.load %arg5[%c0_148, %c1_149, %c0_150] : memref<2x8x96xf32, #tpu.memory_space<vmem>>, vector<1x1x32xf32>
    %205 = vector.shape_cast %204 : vector<1x1x32xf32> to vector<32xf32>
    %206 = vector.shape_cast %205 : vector<32xf32> to vector<1x32xf32>
    %207 = vector.broadcast %206 : vector<1x32xf32> to vector<16x32xf32>
    %208 = arith.addf %203, %207 : vector<16x32xf32>
    %209 = vector.shape_cast %208 : vector<16x32xf32> to vector<2x8x32xf32>
    %210 = arith.addf %142, %209 : vector<2x8x32xf32>
    %c0_151 = arith.constant 0 : index
    %c2_152 = arith.constant 2 : index
    %c0_153 = arith.constant 0 : index
    %211 = vector.load %arg5[%c0_151, %c2_152, %c0_153] : memref<2x8x96xf32, #tpu.memory_space<vmem>>, vector<1x1x32xf32>
    %212 = vector.shape_cast %211 : vector<1x1x32xf32> to vector<32xf32>
    %c0_154 = arith.constant 0 : index
    %c3_155 = arith.constant 3 : index
    %c0_156 = arith.constant 0 : index
    %213 = vector.load %arg5[%c0_154, %c3_155, %c0_156] : memref<2x8x96xf32, #tpu.memory_space<vmem>>, vector<1x1x32xf32>
    %214 = vector.shape_cast %213 : vector<1x1x32xf32> to vector<32xf32>
    %cst_157 = arith.constant dense<0.000000e+00> : vector<2x8xf32>
    %215 = vector.multi_reduction <add>, %210, %cst_157 [2] : vector<2x8x32xf32> to vector<2x8xf32>
    %216 = vector.shape_cast %215 : vector<2x8xf32> to vector<2x8x1xf32>
    %cst_158 = arith.constant 3.200000e+01 : f32
    %217 = vector.broadcast %cst_158 : f32 to vector<2x8x1xf32>
    %218 = arith.divf %216, %217 : vector<2x8x1xf32>
    %219 = vector.broadcast %218 : vector<2x8x1xf32> to vector<2x8x32xf32>
    %220 = arith.subf %210, %219 : vector<2x8x32xf32>
    %221 = arith.mulf %220, %220 : vector<2x8x32xf32>
    %cst_159 = arith.constant dense<0.000000e+00> : vector<2x8xf32>
    %222 = vector.multi_reduction <add>, %221, %cst_159 [2] : vector<2x8x32xf32> to vector<2x8xf32>
    %223 = vector.shape_cast %222 : vector<2x8xf32> to vector<2x8x1xf32>
    %cst_160 = arith.constant 3.200000e+01 : f32
    %224 = vector.broadcast %cst_160 : f32 to vector<2x8x1xf32>
    %225 = arith.divf %223, %224 : vector<2x8x1xf32>
    %cst_161 = arith.constant 9.99999996E-13 : f32
    %226 = vector.broadcast %cst_161 : f32 to vector<2x8x1xf32>
    %227 = arith.addf %225, %226 : vector<2x8x1xf32>
    %228 = math.rsqrt %227 : vector<2x8x1xf32>
    %229 = vector.broadcast %228 : vector<2x8x1xf32> to vector<2x8x32xf32>
    %230 = arith.mulf %220, %229 : vector<2x8x32xf32>
    %231 = vector.shape_cast %212 : vector<32xf32> to vector<1x1x32xf32>
    %232 = vector.broadcast %231 : vector<1x1x32xf32> to vector<2x8x32xf32>
    %233 = arith.mulf %230, %232 : vector<2x8x32xf32>
    %234 = vector.shape_cast %214 : vector<32xf32> to vector<1x1x32xf32>
    %235 = vector.broadcast %234 : vector<1x1x32xf32> to vector<2x8x32xf32>
    %236 = arith.addf %233, %235 : vector<2x8x32xf32>
    %237 = vector.shape_cast %236 : vector<2x8x32xf32> to vector<16x32xf32>
    %c0_162 = arith.constant 0 : index
    %c0_163 = arith.constant 0 : index
    %c0_164 = arith.constant 0 : index
    %238 = vector.load %arg8[%c0_162, %c0_163, %c0_164] : memref<2x32x64xf32, #tpu.memory_space<vmem>>, vector<1x32x64xf32>
    %239 = vector.shape_cast %238 : vector<1x32x64xf32> to vector<32x64xf32>
    %cst_165 = arith.constant dense<0.000000e+00> : vector<16x64xf32>
    %240 = tpu.matmul %237, %239, %cst_165 {dimension_numbers = #tpu.dot_dimension_numbers<[1], [0], [0], [1], [0, 0, 1, 1], [], []>} : vector<16x32xf32>, vector<32x64xf32>, vector<16x64xf32> -> vector<16x64xf32>
    %c0_166 = arith.constant 0 : index
    %c4_167 = arith.constant 4 : index
    %c0_168 = arith.constant 0 : index
    %241 = vector.load %arg5[%c0_166, %c4_167, %c0_168] : memref<2x8x96xf32, #tpu.memory_space<vmem>>, vector<1x1x64xf32>
    %242 = vector.shape_cast %241 : vector<1x1x64xf32> to vector<64xf32>
    %243 = vector.shape_cast %242 : vector<64xf32> to vector<1x64xf32>
    %244 = vector.broadcast %243 : vector<1x64xf32> to vector<16x64xf32>
    %245 = arith.addf %240, %244 : vector<16x64xf32>
    %246 = arith.mulf %245, %245 : vector<16x64xf32>
    %247 = arith.mulf %245, %246 : vector<16x64xf32>
    %cst_169 = arith.constant 4.471500e-02 : f32
    %248 = vector.broadcast %cst_169 : f32 to vector<16x64xf32>
    %249 = arith.mulf %248, %247 : vector<16x64xf32>
    %250 = arith.addf %245, %249 : vector<16x64xf32>
    %cst_170 = arith.constant 0.797884583 : f32
    %251 = vector.broadcast %cst_170 : f32 to vector<16x64xf32>
    %252 = arith.mulf %251, %250 : vector<16x64xf32>
    %253 = math.tanh %252 : vector<16x64xf32>
    %cst_171 = arith.constant 1.000000e+00 : f32
    %254 = vector.broadcast %cst_171 : f32 to vector<16x64xf32>
    %255 = arith.addf %254, %253 : vector<16x64xf32>
    %cst_172 = arith.constant 5.000000e-01 : f32
    %256 = vector.broadcast %cst_172 : f32 to vector<16x64xf32>
    %257 = arith.mulf %256, %255 : vector<16x64xf32>
    %258 = arith.mulf %245, %257 : vector<16x64xf32>
    %c0_173 = arith.constant 0 : index
    %c0_174 = arith.constant 0 : index
    %c0_175 = arith.constant 0 : index
    %259 = vector.load %arg9[%c0_173, %c0_174, %c0_175] : memref<2x64x32xf32, #tpu.memory_space<vmem>>, vector<1x64x32xf32>
    %260 = vector.shape_cast %259 : vector<1x64x32xf32> to vector<64x32xf32>
    %cst_176 = arith.constant dense<0.000000e+00> : vector<16x32xf32>
    %261 = tpu.matmul %258, %260, %cst_176 {dimension_numbers = #tpu.dot_dimension_numbers<[1], [0], [0], [1], [0, 0, 1, 1], [], []>} : vector<16x64xf32>, vector<64x32xf32>, vector<16x32xf32> -> vector<16x32xf32>
    %c0_177 = arith.constant 0 : index
    %c5_178 = arith.constant 5 : index
    %c0_179 = arith.constant 0 : index
    %262 = vector.load %arg5[%c0_177, %c5_178, %c0_179] : memref<2x8x96xf32, #tpu.memory_space<vmem>>, vector<1x1x32xf32>
    %263 = vector.shape_cast %262 : vector<1x1x32xf32> to vector<32xf32>
    %264 = vector.shape_cast %263 : vector<32xf32> to vector<1x32xf32>
    %265 = vector.broadcast %264 : vector<1x32xf32> to vector<16x32xf32>
    %266 = arith.addf %261, %265 : vector<16x32xf32>
    %267 = vector.shape_cast %266 : vector<16x32xf32> to vector<2x8x32xf32>
    %268 = arith.addf %236, %267 : vector<2x8x32xf32>
    %c0_180 = arith.constant 0 : index
    %c6_181 = arith.constant 6 : index
    %c0_182 = arith.constant 0 : index
    %269 = vector.load %arg5[%c0_180, %c6_181, %c0_182] : memref<2x8x96xf32, #tpu.memory_space<vmem>>, vector<1x1x32xf32>
    %270 = vector.shape_cast %269 : vector<1x1x32xf32> to vector<32xf32>
    %c0_183 = arith.constant 0 : index
    %c7_184 = arith.constant 7 : index
    %c0_185 = arith.constant 0 : index
    %271 = vector.load %arg5[%c0_183, %c7_184, %c0_185] : memref<2x8x96xf32, #tpu.memory_space<vmem>>, vector<1x1x32xf32>
    %272 = vector.shape_cast %271 : vector<1x1x32xf32> to vector<32xf32>
    %cst_186 = arith.constant dense<0.000000e+00> : vector<2x8xf32>
    %273 = vector.multi_reduction <add>, %268, %cst_186 [2] : vector<2x8x32xf32> to vector<2x8xf32>
    %274 = vector.shape_cast %273 : vector<2x8xf32> to vector<2x8x1xf32>
    %cst_187 = arith.constant 3.200000e+01 : f32
    %275 = vector.broadcast %cst_187 : f32 to vector<2x8x1xf32>
    %276 = arith.divf %274, %275 : vector<2x8x1xf32>
    %277 = vector.broadcast %276 : vector<2x8x1xf32> to vector<2x8x32xf32>
    %278 = arith.subf %268, %277 : vector<2x8x32xf32>
    %279 = arith.mulf %278, %278 : vector<2x8x32xf32>
    %cst_188 = arith.constant dense<0.000000e+00> : vector<2x8xf32>
    %280 = vector.multi_reduction <add>, %279, %cst_188 [2] : vector<2x8x32xf32> to vector<2x8xf32>
    %281 = vector.shape_cast %280 : vector<2x8xf32> to vector<2x8x1xf32>
    %cst_189 = arith.constant 3.200000e+01 : f32
    %282 = vector.broadcast %cst_189 : f32 to vector<2x8x1xf32>
    %283 = arith.divf %281, %282 : vector<2x8x1xf32>
    %cst_190 = arith.constant 9.99999996E-13 : f32
    %284 = vector.broadcast %cst_190 : f32 to vector<2x8x1xf32>
    %285 = arith.addf %283, %284 : vector<2x8x1xf32>
    %286 = math.rsqrt %285 : vector<2x8x1xf32>
    %287 = vector.broadcast %286 : vector<2x8x1xf32> to vector<2x8x32xf32>
    %288 = arith.mulf %278, %287 : vector<2x8x32xf32>
    %289 = vector.shape_cast %270 : vector<32xf32> to vector<1x1x32xf32>
    %290 = vector.broadcast %289 : vector<1x1x32xf32> to vector<2x8x32xf32>
    %291 = arith.mulf %288, %290 : vector<2x8x32xf32>
    %292 = vector.shape_cast %272 : vector<32xf32> to vector<1x1x32xf32>
    %293 = vector.broadcast %292 : vector<1x1x32xf32> to vector<2x8x32xf32>
    %294 = arith.addf %291, %293 : vector<2x8x32xf32>
    %295 = vector.shape_cast %294 : vector<2x8x32xf32> to vector<16x32xf32>
    %c1_191 = arith.constant 1 : index
    %c0_192 = arith.constant 0 : index
    %c0_193 = arith.constant 0 : index
    %296 = vector.load %arg6[%c1_191, %c0_192, %c0_193] : memref<2x32x96xf32, #tpu.memory_space<vmem>>, vector<1x32x96xf32>
    %297 = vector.shape_cast %296 : vector<1x32x96xf32> to vector<32x96xf32>
    %cst_194 = arith.constant dense<0.000000e+00> : vector<16x96xf32>
    %298 = tpu.matmul %295, %297, %cst_194 {dimension_numbers = #tpu.dot_dimension_numbers<[1], [0], [0], [1], [0, 0, 1, 1], [], []>} : vector<16x32xf32>, vector<32x96xf32>, vector<16x96xf32> -> vector<16x96xf32>
    %c1_195 = arith.constant 1 : index
    %c0_196 = arith.constant 0 : index
    %c0_197 = arith.constant 0 : index
    %299 = vector.load %arg5[%c1_195, %c0_196, %c0_197] : memref<2x8x96xf32, #tpu.memory_space<vmem>>, vector<1x1x96xf32>
    %300 = vector.shape_cast %299 : vector<1x1x96xf32> to vector<96xf32>
    %301 = vector.shape_cast %300 : vector<96xf32> to vector<1x96xf32>
    %302 = vector.broadcast %301 : vector<1x96xf32> to vector<16x96xf32>
    %303 = arith.addf %298, %302 : vector<16x96xf32>
    %304 = vector.shape_cast %303 : vector<16x96xf32> to vector<2x8x96xf32>
    %305 = vector.extract_strided_slice %304 {offsets = [0, 0, 0], sizes = [2, 8, 16], strides = [1, 1, 1]} : vector<2x8x96xf32> to vector<2x8x16xf32>
    %306 = vector.extract_strided_slice %304 {offsets = [0, 0, 32], sizes = [2, 8, 16], strides = [1, 1, 1]} : vector<2x8x96xf32> to vector<2x8x16xf32>
    %307 = vector.extract_strided_slice %304 {offsets = [0, 0, 64], sizes = [2, 8, 16], strides = [1, 1, 1]} : vector<2x8x96xf32> to vector<2x8x16xf32>
    "tpu.trace_start"() <{level = 10 : i32, message = "bqd,bkd->bqk"}> : () -> ()
    %cst_198 = arith.constant dense<0.000000e+00> : vector<2x8x8xf32>
    %308 = tpu.matmul %305, %306, %cst_198 {dimension_numbers = #tpu.dot_dimension_numbers<[2], [2], [1], [1], [0, 0, 0, 1, 1, 1], [0], [0]>} : vector<2x8x16xf32>, vector<2x8x16xf32>, vector<2x8x8xf32> -> vector<2x8x8xf32>
    "tpu.trace_stop"() : () -> ()
    %cst_199 = arith.constant 2.500000e-01 : f32
    %309 = vector.broadcast %cst_199 : f32 to vector<2x8x8xf32>
    %310 = arith.mulf %308, %309 : vector<2x8x8xf32>
    %311 = vector.broadcast %148 : vector<2x1x8xf32> to vector<2x8x8xf32>
    %312 = arith.addf %310, %311 : vector<2x8x8xf32>
    %cst_200 = arith.constant dense<0xFF800000> : vector<2x8xf32>
    %313 = vector.multi_reduction <maximumf>, %312, %cst_200 [2] : vector<2x8x8xf32> to vector<2x8xf32>
    %314 = vector.shape_cast %313 : vector<2x8xf32> to vector<2x8x1xf32>
    %315 = vector.broadcast %314 : vector<2x8x1xf32> to vector<2x8x8xf32>
    %316 = arith.subf %312, %315 : vector<2x8x8xf32>
    %317 = math.exp %316 : vector<2x8x8xf32>
    %cst_201 = arith.constant dense<0.000000e+00> : vector<2x8xf32>
    %318 = vector.multi_reduction <add>, %317, %cst_201 [2] : vector<2x8x8xf32> to vector<2x8xf32>
    %319 = vector.shape_cast %318 : vector<2x8xf32> to vector<2x8x1xf32>
    %320 = vector.broadcast %319 : vector<2x8x1xf32> to vector<2x8x8xf32>
    %321 = arith.divf %317, %320 : vector<2x8x8xf32>
    "tpu.trace_start"() <{level = 10 : i32, message = "bqk,bkd->bqd"}> : () -> ()
    %cst_202 = arith.constant dense<0.000000e+00> : vector<2x8x16xf32>
    %322 = tpu.matmul %321, %307, %cst_202 {dimension_numbers = #tpu.dot_dimension_numbers<[2], [1], [1], [2], [0, 0, 0, 1, 1, 2], [0], [0]>} : vector<2x8x8xf32>, vector<2x8x16xf32>, vector<2x8x16xf32> -> vector<2x8x16xf32>
    "tpu.trace_stop"() : () -> ()
    %323 = vector.shape_cast %322 : vector<2x8x16xf32> to vector<16x16xf32>
    %c1_203 = arith.constant 1 : index
    %c0_204 = arith.constant 0 : index
    %c0_205 = arith.constant 0 : index
    %c0_206 = arith.constant 0 : index
    %324 = vector.load %arg7[%c1_203, %c0_204, %c0_205, %c0_206] : memref<2x2x16x32xf32, #tpu.memory_space<vmem>>, vector<1x1x16x32xf32>
    %325 = vector.shape_cast %324 : vector<1x1x16x32xf32> to vector<16x32xf32>
    %cst_207 = arith.constant dense<0.000000e+00> : vector<16x32xf32>
    %326 = tpu.matmul %323, %325, %cst_207 {dimension_numbers = #tpu.dot_dimension_numbers<[1], [0], [0], [1], [0, 0, 1, 1], [], []>} : vector<16x16xf32>, vector<16x32xf32>, vector<16x32xf32> -> vector<16x32xf32>
    %327 = vector.extract_strided_slice %304 {offsets = [0, 0, 16], sizes = [2, 8, 16], strides = [1, 1, 1]} : vector<2x8x96xf32> to vector<2x8x16xf32>
    %328 = vector.extract_strided_slice %304 {offsets = [0, 0, 48], sizes = [2, 8, 16], strides = [1, 1, 1]} : vector<2x8x96xf32> to vector<2x8x16xf32>
    %329 = vector.extract_strided_slice %304 {offsets = [0, 0, 80], sizes = [2, 8, 16], strides = [1, 1, 1]} : vector<2x8x96xf32> to vector<2x8x16xf32>
    "tpu.trace_start"() <{level = 10 : i32, message = "bqd,bkd->bqk"}> : () -> ()
    %cst_208 = arith.constant dense<0.000000e+00> : vector<2x8x8xf32>
    %330 = tpu.matmul %327, %328, %cst_208 {dimension_numbers = #tpu.dot_dimension_numbers<[2], [2], [1], [1], [0, 0, 0, 1, 1, 1], [0], [0]>} : vector<2x8x16xf32>, vector<2x8x16xf32>, vector<2x8x8xf32> -> vector<2x8x8xf32>
    "tpu.trace_stop"() : () -> ()
    %cst_209 = arith.constant 2.500000e-01 : f32
    %331 = vector.broadcast %cst_209 : f32 to vector<2x8x8xf32>
    %332 = arith.mulf %330, %331 : vector<2x8x8xf32>
    %333 = vector.broadcast %148 : vector<2x1x8xf32> to vector<2x8x8xf32>
    %334 = arith.addf %332, %333 : vector<2x8x8xf32>
    %cst_210 = arith.constant dense<0xFF800000> : vector<2x8xf32>
    %335 = vector.multi_reduction <maximumf>, %334, %cst_210 [2] : vector<2x8x8xf32> to vector<2x8xf32>
    %336 = vector.shape_cast %335 : vector<2x8xf32> to vector<2x8x1xf32>
    %337 = vector.broadcast %336 : vector<2x8x1xf32> to vector<2x8x8xf32>
    %338 = arith.subf %334, %337 : vector<2x8x8xf32>
    %339 = math.exp %338 : vector<2x8x8xf32>
    %cst_211 = arith.constant dense<0.000000e+00> : vector<2x8xf32>
    %340 = vector.multi_reduction <add>, %339, %cst_211 [2] : vector<2x8x8xf32> to vector<2x8xf32>
    %341 = vector.shape_cast %340 : vector<2x8xf32> to vector<2x8x1xf32>
    %342 = vector.broadcast %341 : vector<2x8x1xf32> to vector<2x8x8xf32>
    %343 = arith.divf %339, %342 : vector<2x8x8xf32>
    "tpu.trace_start"() <{level = 10 : i32, message = "bqk,bkd->bqd"}> : () -> ()
    %cst_212 = arith.constant dense<0.000000e+00> : vector<2x8x16xf32>
    %344 = tpu.matmul %343, %329, %cst_212 {dimension_numbers = #tpu.dot_dimension_numbers<[2], [1], [1], [2], [0, 0, 0, 1, 1, 2], [0], [0]>} : vector<2x8x8xf32>, vector<2x8x16xf32>, vector<2x8x16xf32> -> vector<2x8x16xf32>
    "tpu.trace_stop"() : () -> ()
    %345 = vector.shape_cast %344 : vector<2x8x16xf32> to vector<16x16xf32>
    %c1_213 = arith.constant 1 : index
    %c1_214 = arith.constant 1 : index
    %c0_215 = arith.constant 0 : index
    %c0_216 = arith.constant 0 : index
    %346 = vector.load %arg7[%c1_213, %c1_214, %c0_215, %c0_216] : memref<2x2x16x32xf32, #tpu.memory_space<vmem>>, vector<1x1x16x32xf32>
    %347 = vector.shape_cast %346 : vector<1x1x16x32xf32> to vector<16x32xf32>
    %cst_217 = arith.constant dense<0.000000e+00> : vector<16x32xf32>
    %348 = tpu.matmul %345, %347, %cst_217 {dimension_numbers = #tpu.dot_dimension_numbers<[1], [0], [0], [1], [0, 0, 1, 1], [], []>} : vector<16x16xf32>, vector<16x32xf32>, vector<16x32xf32> -> vector<16x32xf32>
    %349 = arith.addf %326, %348 : vector<16x32xf32>
    %c1_218 = arith.constant 1 : index
    %c1_219 = arith.constant 1 : index
    %c0_220 = arith.constant 0 : index
    %350 = vector.load %arg5[%c1_218, %c1_219, %c0_220] : memref<2x8x96xf32, #tpu.memory_space<vmem>>, vector<1x1x32xf32>
    %351 = vector.shape_cast %350 : vector<1x1x32xf32> to vector<32xf32>
    %352 = vector.shape_cast %351 : vector<32xf32> to vector<1x32xf32>
    %353 = vector.broadcast %352 : vector<1x32xf32> to vector<16x32xf32>
    %354 = arith.addf %349, %353 : vector<16x32xf32>
    %355 = vector.shape_cast %354 : vector<16x32xf32> to vector<2x8x32xf32>
    %356 = arith.addf %294, %355 : vector<2x8x32xf32>
    %c1_221 = arith.constant 1 : index
    %c2_222 = arith.constant 2 : index
    %c0_223 = arith.constant 0 : index
    %357 = vector.load %arg5[%c1_221, %c2_222, %c0_223] : memref<2x8x96xf32, #tpu.memory_space<vmem>>, vector<1x1x32xf32>
    %358 = vector.shape_cast %357 : vector<1x1x32xf32> to vector<32xf32>
    %c1_224 = arith.constant 1 : index
    %c3_225 = arith.constant 3 : index
    %c0_226 = arith.constant 0 : index
    %359 = vector.load %arg5[%c1_224, %c3_225, %c0_226] : memref<2x8x96xf32, #tpu.memory_space<vmem>>, vector<1x1x32xf32>
    %360 = vector.shape_cast %359 : vector<1x1x32xf32> to vector<32xf32>
    %cst_227 = arith.constant dense<0.000000e+00> : vector<2x8xf32>
    %361 = vector.multi_reduction <add>, %356, %cst_227 [2] : vector<2x8x32xf32> to vector<2x8xf32>
    %362 = vector.shape_cast %361 : vector<2x8xf32> to vector<2x8x1xf32>
    %cst_228 = arith.constant 3.200000e+01 : f32
    %363 = vector.broadcast %cst_228 : f32 to vector<2x8x1xf32>
    %364 = arith.divf %362, %363 : vector<2x8x1xf32>
    %365 = vector.broadcast %364 : vector<2x8x1xf32> to vector<2x8x32xf32>
    %366 = arith.subf %356, %365 : vector<2x8x32xf32>
    %367 = arith.mulf %366, %366 : vector<2x8x32xf32>
    %cst_229 = arith.constant dense<0.000000e+00> : vector<2x8xf32>
    %368 = vector.multi_reduction <add>, %367, %cst_229 [2] : vector<2x8x32xf32> to vector<2x8xf32>
    %369 = vector.shape_cast %368 : vector<2x8xf32> to vector<2x8x1xf32>
    %cst_230 = arith.constant 3.200000e+01 : f32
    %370 = vector.broadcast %cst_230 : f32 to vector<2x8x1xf32>
    %371 = arith.divf %369, %370 : vector<2x8x1xf32>
    %cst_231 = arith.constant 9.99999996E-13 : f32
    %372 = vector.broadcast %cst_231 : f32 to vector<2x8x1xf32>
    %373 = arith.addf %371, %372 : vector<2x8x1xf32>
    %374 = math.rsqrt %373 : vector<2x8x1xf32>
    %375 = vector.broadcast %374 : vector<2x8x1xf32> to vector<2x8x32xf32>
    %376 = arith.mulf %366, %375 : vector<2x8x32xf32>
    %377 = vector.shape_cast %358 : vector<32xf32> to vector<1x1x32xf32>
    %378 = vector.broadcast %377 : vector<1x1x32xf32> to vector<2x8x32xf32>
    %379 = arith.mulf %376, %378 : vector<2x8x32xf32>
    %380 = vector.shape_cast %360 : vector<32xf32> to vector<1x1x32xf32>
    %381 = vector.broadcast %380 : vector<1x1x32xf32> to vector<2x8x32xf32>
    %382 = arith.addf %379, %381 : vector<2x8x32xf32>
    %383 = vector.shape_cast %382 : vector<2x8x32xf32> to vector<16x32xf32>
    %c1_232 = arith.constant 1 : index
    %c0_233 = arith.constant 0 : index
    %c0_234 = arith.constant 0 : index
    %384 = vector.load %arg8[%c1_232, %c0_233, %c0_234] : memref<2x32x64xf32, #tpu.memory_space<vmem>>, vector<1x32x64xf32>
    %385 = vector.shape_cast %384 : vector<1x32x64xf32> to vector<32x64xf32>
    %cst_235 = arith.constant dense<0.000000e+00> : vector<16x64xf32>
    %386 = tpu.matmul %383, %385, %cst_235 {dimension_numbers = #tpu.dot_dimension_numbers<[1], [0], [0], [1], [0, 0, 1, 1], [], []>} : vector<16x32xf32>, vector<32x64xf32>, vector<16x64xf32> -> vector<16x64xf32>
    %c1_236 = arith.constant 1 : index
    %c4_237 = arith.constant 4 : index
    %c0_238 = arith.constant 0 : index
    %387 = vector.load %arg5[%c1_236, %c4_237, %c0_238] : memref<2x8x96xf32, #tpu.memory_space<vmem>>, vector<1x1x64xf32>
    %388 = vector.shape_cast %387 : vector<1x1x64xf32> to vector<64xf32>
    %389 = vector.shape_cast %388 : vector<64xf32> to vector<1x64xf32>
    %390 = vector.broadcast %389 : vector<1x64xf32> to vector<16x64xf32>
    %391 = arith.addf %386, %390 : vector<16x64xf32>
    %392 = arith.mulf %391, %391 : vector<16x64xf32>
    %393 = arith.mulf %391, %392 : vector<16x64xf32>
    %cst_239 = arith.constant 4.471500e-02 : f32
    %394 = vector.broadcast %cst_239 : f32 to vector<16x64xf32>
    %395 = arith.mulf %394, %393 : vector<16x64xf32>
    %396 = arith.addf %391, %395 : vector<16x64xf32>
    %cst_240 = arith.constant 0.797884583 : f32
    %397 = vector.broadcast %cst_240 : f32 to vector<16x64xf32>
    %398 = arith.mulf %397, %396 : vector<16x64xf32>
    %399 = math.tanh %398 : vector<16x64xf32>
    %cst_241 = arith.constant 1.000000e+00 : f32
    %400 = vector.broadcast %cst_241 : f32 to vector<16x64xf32>
    %401 = arith.addf %400, %399 : vector<16x64xf32>
    %cst_242 = arith.constant 5.000000e-01 : f32
    %402 = vector.broadcast %cst_242 : f32 to vector<16x64xf32>
    %403 = arith.mulf %402, %401 : vector<16x64xf32>
    %404 = arith.mulf %391, %403 : vector<16x64xf32>
    %c1_243 = arith.constant 1 : index
    %c0_244 = arith.constant 0 : index
    %c0_245 = arith.constant 0 : index
    %405 = vector.load %arg9[%c1_243, %c0_244, %c0_245] : memref<2x64x32xf32, #tpu.memory_space<vmem>>, vector<1x64x32xf32>
    %406 = vector.shape_cast %405 : vector<1x64x32xf32> to vector<64x32xf32>
    %cst_246 = arith.constant dense<0.000000e+00> : vector<16x32xf32>
    %407 = tpu.matmul %404, %406, %cst_246 {dimension_numbers = #tpu.dot_dimension_numbers<[1], [0], [0], [1], [0, 0, 1, 1], [], []>} : vector<16x64xf32>, vector<64x32xf32>, vector<16x32xf32> -> vector<16x32xf32>
    %c1_247 = arith.constant 1 : index
    %c5_248 = arith.constant 5 : index
    %c0_249 = arith.constant 0 : index
    %408 = vector.load %arg5[%c1_247, %c5_248, %c0_249] : memref<2x8x96xf32, #tpu.memory_space<vmem>>, vector<1x1x32xf32>
    %409 = vector.shape_cast %408 : vector<1x1x32xf32> to vector<32xf32>
    %410 = vector.shape_cast %409 : vector<32xf32> to vector<1x32xf32>
    %411 = vector.broadcast %410 : vector<1x32xf32> to vector<16x32xf32>
    %412 = arith.addf %407, %411 : vector<16x32xf32>
    %413 = vector.shape_cast %412 : vector<16x32xf32> to vector<2x8x32xf32>
    %414 = arith.addf %382, %413 : vector<2x8x32xf32>
    %c1_250 = arith.constant 1 : index
    %c6_251 = arith.constant 6 : index
    %c0_252 = arith.constant 0 : index
    %415 = vector.load %arg5[%c1_250, %c6_251, %c0_252] : memref<2x8x96xf32, #tpu.memory_space<vmem>>, vector<1x1x32xf32>
    %416 = vector.shape_cast %415 : vector<1x1x32xf32> to vector<32xf32>
    %c1_253 = arith.constant 1 : index
    %c7_254 = arith.constant 7 : index
    %c0_255 = arith.constant 0 : index
    %417 = vector.load %arg5[%c1_253, %c7_254, %c0_255] : memref<2x8x96xf32, #tpu.memory_space<vmem>>, vector<1x1x32xf32>
    %418 = vector.shape_cast %417 : vector<1x1x32xf32> to vector<32xf32>
    %cst_256 = arith.constant dense<0.000000e+00> : vector<2x8xf32>
    %419 = vector.multi_reduction <add>, %414, %cst_256 [2] : vector<2x8x32xf32> to vector<2x8xf32>
    %420 = vector.shape_cast %419 : vector<2x8xf32> to vector<2x8x1xf32>
    %cst_257 = arith.constant 3.200000e+01 : f32
    %421 = vector.broadcast %cst_257 : f32 to vector<2x8x1xf32>
    %422 = arith.divf %420, %421 : vector<2x8x1xf32>
    %423 = vector.broadcast %422 : vector<2x8x1xf32> to vector<2x8x32xf32>
    %424 = arith.subf %414, %423 : vector<2x8x32xf32>
    %425 = arith.mulf %424, %424 : vector<2x8x32xf32>
    %cst_258 = arith.constant dense<0.000000e+00> : vector<2x8xf32>
    %426 = vector.multi_reduction <add>, %425, %cst_258 [2] : vector<2x8x32xf32> to vector<2x8xf32>
    %427 = vector.shape_cast %426 : vector<2x8xf32> to vector<2x8x1xf32>
    %cst_259 = arith.constant 3.200000e+01 : f32
    %428 = vector.broadcast %cst_259 : f32 to vector<2x8x1xf32>
    %429 = arith.divf %427, %428 : vector<2x8x1xf32>
    %cst_260 = arith.constant 9.99999996E-13 : f32
    %430 = vector.broadcast %cst_260 : f32 to vector<2x8x1xf32>
    %431 = arith.addf %429, %430 : vector<2x8x1xf32>
    %432 = math.rsqrt %431 : vector<2x8x1xf32>
    %433 = vector.broadcast %432 : vector<2x8x1xf32> to vector<2x8x32xf32>
    %434 = arith.mulf %424, %433 : vector<2x8x32xf32>
    %435 = vector.shape_cast %416 : vector<32xf32> to vector<1x1x32xf32>
    %436 = vector.broadcast %435 : vector<1x1x32xf32> to vector<2x8x32xf32>
    %437 = arith.mulf %434, %436 : vector<2x8x32xf32>
    %438 = vector.shape_cast %418 : vector<32xf32> to vector<1x1x32xf32>
    %439 = vector.broadcast %438 : vector<1x1x32xf32> to vector<2x8x32xf32>
    %440 = arith.addf %437, %439 : vector<2x8x32xf32>
    %441 = vector.extract_strided_slice %440 {offsets = [0, 0, 0], sizes = [2, 1, 32], strides = [1, 1, 1]} : vector<2x8x32xf32> to vector<2x1x32xf32>
    %442 = vector.shape_cast %441 : vector<2x1x32xf32> to vector<2x32xf32>
    %c0_261 = arith.constant 0 : index
    %c0_262 = arith.constant 0 : index
    %443 = vector.load %arg10[%c0_261, %c0_262] : memref<32x3xf32, #tpu.memory_space<vmem>>, vector<32x3xf32>
    %cst_263 = arith.constant dense<0.000000e+00> : vector<2x3xf32>
    %444 = tpu.matmul %442, %443, %cst_263 {dimension_numbers = #tpu.dot_dimension_numbers<[1], [0], [0], [1], [0, 0, 1, 1], [], []>} : vector<2x32xf32>, vector<32x3xf32>, vector<2x3xf32> -> vector<2x3xf32>
    %c2_264 = arith.constant 2 : index
    %c0_265 = arith.constant 0 : index
    %445 = vector.load %arg4[%c2_264, %c0_265] : memref<3x32xf32, #tpu.memory_space<vmem>>, vector<1x3xf32>
    %446 = vector.shape_cast %445 : vector<1x3xf32> to vector<3xf32>
    %447 = vector.shape_cast %446 : vector<3xf32> to vector<1x3xf32>
    %448 = vector.broadcast %447 : vector<1x3xf32> to vector<2x3xf32>
    %449 = arith.addf %444, %448 : vector<2x3xf32>
    %cst_266 = arith.constant dense<0xFF800000> : vector<2xf32>
    %450 = vector.multi_reduction <maximumf>, %449, %cst_266 [1] : vector<2x3xf32> to vector<2xf32>
    %451 = vector.shape_cast %450 : vector<2xf32> to vector<2x1xf32>
    %452 = vector.broadcast %451 : vector<2x1xf32> to vector<2x3xf32>
    %453 = arith.subf %449, %452 : vector<2x3xf32>
    %454 = math.exp %453 : vector<2x3xf32>
    %cst_267 = arith.constant dense<0.000000e+00> : vector<2xf32>
    %455 = vector.multi_reduction <add>, %454, %cst_267 [1] : vector<2x3xf32> to vector<2xf32>
    %456 = vector.shape_cast %455 : vector<2xf32> to vector<2x1xf32>
    %457 = vector.broadcast %456 : vector<2x1xf32> to vector<2x3xf32>
    %458 = arith.divf %454, %457 : vector<2x3xf32>
    %c0_268 = arith.constant 0 : index
    %c0_269 = arith.constant 0 : index
    %c0_270 = arith.constant 0 : index
    %459 = vector.load %arg11[%c0_268, %c0_269, %c0_270] : memref<2x2x3xf32, #tpu.memory_space<vmem>>, vector<1x2x3xf32>
    %460 = vector.shape_cast %459 : vector<1x2x3xf32> to vector<2x3xf32>
    %461 = vector.shape_cast %449 : vector<2x3xf32> to vector<1x2x3xf32>
    tpu.vector_store %arg11[%c0_268, %c0_269, %c0_270], %461 {strides = array<i32>} : memref<2x2x3xf32, #tpu.memory_space<vmem>>, vector<1x2x3xf32>,
    %c1_271 = arith.constant 1 : index
    %c0_272 = arith.constant 0 : index
    %c0_273 = arith.constant 0 : index
    %462 = vector.load %arg11[%c1_271, %c0_272, %c0_273] : memref<2x2x3xf32, #tpu.memory_space<vmem>>, vector<1x2x3xf32>
    %463 = vector.shape_cast %462 : vector<1x2x3xf32> to vector<2x3xf32>
    %464 = vector.shape_cast %458 : vector<2x3xf32> to vector<1x2x3xf32>
    tpu.vector_store %arg11[%c1_271, %c0_272, %c0_273], %464 {strides = array<i32>} : memref<2x2x3xf32, #tpu.memory_space<vmem>>, vector<1x2x3xf32>,
    return
  }
}

</mosaic_0001>

<bundles_post_ra>
// kernel: stance_model_forward.1
= control target key start
LH: loop header
LB: loop body
LE: loop exit
PB: predicated region body
PF: predicated region fallthrough
CT: control target
= control target key end

     0   :  { %s3918_s0 = inlined_call_operand.vmem [shape: s32[2,8], index: 0, kind: input, shape index: {}]   ;;  %s3919_s1 = inlined_call_operand.vmem [shape: f32[2,8], index: 1, kind: input, shape index: {}]   ;;  %s3920_s2 = inlined_call_operand.vmem [shape: f32[50,1,32], index: 2, kind: input, shape index: {}]   ;;  %s3921_s3 = inlined_call_operand.vmem [shape: f32[8,32], index: 3, kind: input, shape index: {}]   ;;  %s3922_s4 = inlined_call_operand.vmem [shape: f32[3,32], index: 4, kind: input, shape index: {}]   ;;  %s3923_s5 = inlined_call_operand.vmem [shape: f32[2,8,96], index: 5, kind: input, shape index: {}]   ;;  %s3924_s6 = inlined_call_operand.vmem [shape: f32[2,32,96], index: 6, kind: input, shape index: {}]   ;;  %s3925_s7 = inlined_call_operand.vmem [shape: f32[2,2,16,32], index: 7, kind: input, shape index: {}]   ;;  %s3926_s8 = inlined_call_operand.vmem [shape: f32[2,32,64], index: 8, kind: input, shape index: {}]   ;;  %s3927_s9 = inlined_call_operand.vmem [shape: f32[2,64,32], index: 9, kind: input, shape index: {}]   ;;  %s3928_s10 = inlined_call_operand.vmem [shape: f32[32,3], index: 10, kind: input, shape index: {}]   ;;  %s3929_s11 = inlined_call_operand.vmem [shape: f32[2,2,3], index: 11, kind: output, shape index: {}]  }
   0x1   :  { %3934 = sst [smem:[#allocation6_spill]] %s3926_s8 }
   0x2   :  { %3935 = sst [smem:[#allocation7_spill]] %s3927_s9 }
   0x3   :  { %3936 = sst [smem:[#allocation8_spill]] %s3928_s10 }
   0x4   :  { %3937 = sst [smem:[#allocation9_spill]] %s3929_s11 }
   0x5   :  { %16 = vsyncpa [#allocation4], 0  ;;  %s23_s19 = sshll.u32 %s3918_s0, 4  ;;  %s24_s19 = int_to_ptr.vmem [resolvable:$true] %s23_s19 }
   0x6   :  { %s3339_s20 = scalar_lea.vmem %s24_s19, 32  ;;  %p3344_p1 = scmp.lt.s32.totalorder %s24_s19, %s24_s19 }
   0x7   :  { %p3340_p0 = scmp.ne.s32.totalorder %s24_s19, %s3339_s20  ;;  %p3345_p2 = scmp.lt.s32.totalorder %s3339_s20, %s3339_s20 }
   0x9   :  { %p3346_p3 = por %p3345_p2, %p3344_p1 }
   0xb   :  { %p3347_p4 = pnand %p3346_p3, %p3340_p0 }
   0xd   :  { %3350 = shalt.err (!%p3347_p4)
}
   0xe   :  { %s3353_s21 = smov [#allocation3]  }
   0xf   :  { %26 = dma.vmem_to_smem %s24_s19, 32, %s3353_s21, [#allocation4]  }
  0x10   :  { %3351 = dma.done.wait [#allocation4], 32  }
  0x11   :  { %3352 = vsyncadd [#allocation4], 4294967264 }
  0x12   :  { %50 = sfence }
  0x13   :  { %s51_s22 = sld [smem:[#allocation3]]  ;;  %s2767_s23 = sld [smem:[#allocation3 + $0x1]]  ;;  %vm54_vm0 = vcmask 253952   ;;  %v119_v12 = vld [vmem:[%s3921_s3] sm:$0xff]  ;;  %vm124_vm1 = vcmask 261120   ;;  %v194_v34 = vld [vmem:[%s3924_s6 + $0x8] sm:$0xff] }
  0x14   :  { %s2768_s24 = sld [smem:[#allocation3 + $0x2]]  ;;  %s2769_s25 = sld [smem:[#allocation3 + $0x3]]  ;;  %v193_v33 = vld [vmem:[%s3924_s6] sm:$0xff]  ;;  %v195_v35 = vld [vmem:[%s3924_s6 + $0x10] sm:$0xff]  ;;  %v196_v37 = vld [vmem:[%s3924_s6 + $0x18] sm:$0xff]  ;;  %v3354_v55 = vmov 0.0  }
  0x15   :  { %s2770_s26 = sld [smem:[#allocation3 + $0x4]]  ;;  %s2771_s27 = sld [smem:[#allocation3 + $0x5]]  ;;  %v3175_v36 = vpack.c.bf16 %v194_v34, %v193_v33  ;;  %v3179_v38 = vpack.c.bf16 %v196_v37, %v195_v35  ;;  %v2782_v46 = vld [vmem:[%s3922_s4] ss:$0 sm:$0xff]  ;;  %v2783_v48 = vld [vmem:[%s3922_s4 + $0x1] ss:$0 sm:$0xff]  ;;  %2985 = vmatprep.subr.mxu1 %v3354_v55 }
  0x16   :  { %s2772_s0 = sld [smem:[#allocation3 + $0x6]]  ;;  %s2773_s28 = sld [smem:[#allocation3 + $0x7]]  ;;  %vm3355_vm2 = vmmov 0   ;;  %v2784_v56 = vld [vmem:[%s3923_s5] ss:$0 sm:$0xff]  ;;  %vm286_vm3 = vcmask 130048  }
  0x17   :  { %s3426_s29 = sld [smem:[#allocation3 + $0x80]]  ;;  %s3428_s30 = sld [smem:[#allocation3 + $0x81]]  ;;  %3176 = vmatprep.subr.bf16.mxu0 %v3175_v36  ;;  %2987 = vmatprep.mubr.msk.f32.mxu1 %vm3355_vm2, %v3354_v55  ;;  %v3357_v63 = vmov 1966171168   ;;  %vm454_vm4 = vcmask 64512   ;;  %vm1300_vm5 = vcmask 523264  }
  0x18   :  { %s3430_s12 = sld [smem:[#allocation3 + $0x82]]  ;;  %s3432_s13 = sld [smem:[#allocation3 + $0x83]]  ;;  %3178 = vmatpush3.bf16.msra.mxu0 %v3175_v36  ;;  %vm2657_vm6 = vcmask 1041409   ;;  %vm2731_vm7 = vcmask 17408  }
  0x19   :  { %s52_s16 = scalar_lea.vmem %s3920_s2, %s51_s22  ;;  %s57_s19 = scalar_lea.vmem %s3920_s2, %s2767_s23  ;;  %3180 = vmatprep.subr.bf16.mxu0 %v3179_v38 }
  0x1a   :  { %v53_v0 = vld [vmem:[%s52_s16] sm:$0x1]  ;;  %s61_s11 = scalar_lea.vmem %s3920_s2, %s2768_s24  ;;  %s65_s8 = scalar_lea.vmem %s3920_s2, %s2769_s25 }
  0x1b   :  { %v58_v1 = vld [vmem:[%s57_s19] sm:$0x1]  ;;  %55 = vst.msk [vmem:[#allocation2] sm:$0x1] %vm54_vm0, %v53_v0  ;;  %s69_s14 = scalar_lea.vmem %s3920_s2, %s2770_s26  ;;  %s73_s24 = scalar_lea.vmem %s3920_s2, %s2771_s27  ;;  %v168_v0 = vunpack.c.l.s4 %v3357_v63 }
  0x1c   :  { %59 = vst.msk [vmem:[#allocation2 + $0x1] sm:$0x1] %vm54_vm0, %v58_v1  ;;  %v62_v2 = vld [vmem:[%s61_s11] sm:$0x1]  ;;  %s81_s26 = scalar_lea.vmem %s3920_s2, %s2773_s28  ;;  %s2780_s16 = sld [smem:[#allocation3 + $0x86]]  ;;  %3182 = vmatpush3.bf16.msra.mxu0 %v3179_v38  ;;  %v170_v1 = vlaneseq }
  0x1d   :  { %v66_v3 = vld [vmem:[%s65_s8] sm:$0x1]  ;;  %63 = vst.msk [vmem:[#allocation2 + $0x2] sm:$0x1] %vm54_vm0, %v62_v2  ;;  %s77_s8 = scalar_lea.vmem %s3920_s2, %s2772_s0  ;;  %s85_s18 = scalar_lea.vmem %s3920_s2, %s3426_s29  ;;  %3005 = vmatprep.subr.mxu0 %v3354_v55  ;;  %v169_v2 = vunpack.c.0.s8 %v168_v0 }
  0x1e   :  { %67 = vst.msk [vmem:[#allocation2 + $0x3] sm:$0x1] %vm54_vm0, %v66_v3  ;;  %v70_v4 = vld [vmem:[%s69_s14] sm:$0x1]  ;;  %s90_s21 = scalar_lea.vmem %s3920_s2, %s3428_s30  ;;  %s94_s22 = scalar_lea.vmem %s3920_s2, %s3430_s12  ;;  %v171_v3 = vshrl.u32 %v170_v1, 7 }
  0x1f   :  { %v74_v5 = vld [vmem:[%s73_s24] sm:$0x1]  ;;  %71 = vst.msk [vmem:[#allocation2 + $0x4] sm:$0x1] %vm54_vm0, %v70_v4  ;;  %s98_s15 = scalar_lea.vmem %s3920_s2, %s3432_s13  ;;  %s2778_s29 = sld [smem:[#allocation3 + $0x84]] }
  0x20   :  { %75 = vst.msk [vmem:[#allocation2 + $0x5] sm:$0x1] %vm54_vm0, %v74_v5  ;;  %v78_v6 = vld [vmem:[%s77_s8] sm:$0x1]  ;;  %s2779_s30 = sld [smem:[#allocation3 + $0x85]]  ;;  %s2781_s24 = sld [smem:[#allocation3 + $0x87]] }
  0x21   :  { %v82_v7 = vld [vmem:[%s81_s26] sm:$0x1]  ;;  %79 = vst.msk [vmem:[#allocation2 + $0x6] sm:$0x1] %vm54_vm0, %v78_v6  ;;  %s3356_s13 = smov 96   ;;  %v172_v6 = vsub.s32 %v169_v2, %v171_v3  ;;  %s3359_s11 = smov 80  }
  0x22   :  { %83 = vst.msk [vmem:[#allocation2 + $0x7] sm:$0x1] %vm54_vm0, %v82_v7  ;;  %v86_v8 = vld [vmem:[%s85_s18] sm:$0x1]  ;;  %s110_s18 = scalar_lea.vmem %s3920_s2, %s2780_s16  ;;  %s3360_s25 = smov 112  }
  0x23   :  { %v91_v9 = vld [vmem:[%s90_s21] sm:$0x1]  ;;  %88 = vst.msk [vmem:[#allocation2 + $0x8] sm:$0x1] %vm54_vm0, %v86_v8  ;;  %s3938_s14 = sld [smem:[#allocation6_spill]]  ;;  %s3939_s3 = sld [smem:[#allocation7_spill]] }
  0x24   :  { %92 = vst.msk [vmem:[#allocation2 + $0x9] sm:$0x1] %vm54_vm0, %v91_v9  ;;  %v95_v10 = vld [vmem:[%s94_s22] sm:$0x1]  ;;  %s3940_s19 = sld [smem:[#allocation8_spill]] }
  0x25   :  { %v99_v11 = vld [vmem:[%s98_s15] sm:$0x1]  ;;  %96 = vst.msk [vmem:[#allocation2 + $0xa] sm:$0x1] %vm54_vm0, %v95_v10  ;;  %s102_s8 = scalar_lea.vmem %s3920_s2, %s2778_s29 }
  0x26   :  { %100 = vst.msk [vmem:[#allocation2 + $0xb] sm:$0x1] %vm54_vm0, %v99_v11  ;;  %v103_v15 = vld [vmem:[%s102_s8] sm:$0x1]  ;;  %s106_s26 = scalar_lea.vmem %s3920_s2, %s2779_s30  ;;  %s114_s20 = scalar_lea.vmem %s3920_s2, %s2781_s24  ;;  %v444_v11 = vsub.s32 0, %v171_v3 }
  0x27   :  { %104 = vst.msk [vmem:[#allocation2 + $0xc] sm:$0x1] %vm54_vm0, %v103_v15  ;;  %v107_v16 = vld [vmem:[%s106_s26] sm:$0x1]  ;;  %s3361_s26 = smov 48  }
  0x28   :  { %v111_v17 = vld [vmem:[%s110_s18] sm:$0x1]  ;;  %108 = vst.msk [vmem:[#allocation2 + $0xd] sm:$0x1] %vm54_vm0, %v107_v16 }
  0x29   :  { %v117_v13 = vld [vmem:[#allocation2] sm:$0xff]  ;;  %112 = vst.msk [vmem:[#allocation2 + $0xe] sm:$0x1] %vm54_vm0, %v111_v17 }
  0x2a   :  { %v120_v14 = vadd.f32 %v119_v12, %v117_v13  ;;  %v115_v19 = vld [vmem:[%s114_s20] sm:$0x1] }
  0x2b   :  { %116 = vst.msk [vmem:[#allocation2 + $0xf] sm:$0x1] %vm54_vm0, %v115_v19  ;;  %v164_v4 = vld [vmem:[%s3919_s1] sm:$0x3]  ;;  %s3358_s1 = smov 64  }
  0x2c   :  { %v125_v18 = vsel %vm124_vm1, %v120_v14, 0.0  ;;  %v165_v5 = vsub.f32 1.0, %v164_v4 }
  0x2d   :  { %126 = vadd.xlane.f32.xlu0 %v125_v18 }
  0x2e   :  { %v173_v7 = vrot.slane %v165_v5, %v172_v6 }
  0x30   :  { %v181_v8 = vrot.slane %v173_v7, %v172_v6  ;;  %v174_v9 = vcombine.high %v173_v7, %v173_v7 }
  0x32   :  { %v118_v20 = vld [vmem:[#allocation2 + $0x8] sm:$0xff]  ;;  %v191_v10 = vmul.f32 -1e+09, %v181_v8 }
  0x33   :  { %v121_v21 = vadd.f32 %v119_v12, %v118_v20  ;;  %v188_v12 = vrot.slane %v174_v9, %v172_v6 }
  0x34   :  { %v3567_v13 = vrot.slane %v191_v10, %v444_v11 }
  0x35   :  { %v128_v22 = vsel %vm124_vm1, %v121_v21, 0.0 }
  0x36   :  { %129 = vadd.xlane.f32.xlu0 %v128_v22 }
  0xba   :  { %v127_v23 = vpop.xlane.xlu0 %126 }
  0xbb   :  { %v132_v24 = vmul.f32 0.03125, %v127_v23 }
  0xbd   :  { %v134_v25 = vsub.f32 %v120_v14, %v132_v24  ;;  %v192_v14 = vmul.f32 -1e+09, %v188_v12 }
  0xbf   :  { %v136_v26 = vmul.f32 %v134_v25, %v134_v25  ;;  %v3570_v19 = vrot.slane %v192_v14, %v444_v11 }
  0xc1   :  { %v138_v27 = vsel %vm124_vm1, %v136_v26, 0.0 }
  0xc2   :  { %139 = vadd.xlane.f32.xlu1 %v138_v27 }
  0xc3   :  { %v130_v28 = vpop.xlane.xlu0 %129 }
  0xc4   :  { %v133_v29 = vmul.f32 0.03125, %v130_v28 }
  0xc6   :  { %v135_v30 = vsub.f32 %v121_v21, %v133_v29 }
  0xc8   :  { %v137_v31 = vmul.f32 %v135_v30, %v135_v30 }
  0xca   :  { %v141_v32 = vsel %vm124_vm1, %v137_v31, 0.0 }
  0xcb   :  { %142 = vadd.xlane.f32.xlu1 %v141_v32 }
 0x14f   :  { %v140_v39 = vpop.xlane.xlu1 %139 }
 0x150   :  { %v144_v40 = vmul.f32 0.03125, %v140_v39 }
 0x152   :  { %v146_v41 = vadd.f32 1e-12, %v144_v40 }
 0x154   :  { %3275 = vrsqrt.f32 %v146_v41 }
 0x158   :  { %v143_v42 = vpop.xlane.xlu1 %142 }
 0x159   :  { %v145_v43 = vmul.f32 0.03125, %v143_v42 }
 0x15b   :  { %v147_v44 = vadd.f32 1e-12, %v145_v43 }
 0x15d   :  { %3277 = vrsqrt.f32 %v147_v44 }
 0x15e   :  { %v3276_v45 = vpop.eup %3275 }
 0x15f   :  { %v150_v47 = vmul.f32 %v3276_v45, %v134_v25 }
 0x161   :  { %v156_v49 = vmul.f32 %v2782_v46, %v150_v47 }
 0x163   :  { %v3527_v50 = vadd.f32 %v2783_v48, %v156_v49 }
 0x165   :  { %2982 = vmatprep.mubr.msk.f32.mxu0 %vm124_vm1, %v3527_v50 }
 0x167   :  { %v3278_v51 = vpop.eup %3277 }
 0x168   :  { %v151_v52 = vmul.f32 %v3278_v51, %v135_v30 }
 0x16a   :  { %v157_v53 = vmul.f32 %v2782_v46, %v151_v52 }
 0x16c   :  { %v3531_v54 = vadd.f32 %v2783_v48, %v157_v53 }
 0x16e   :  { %2983 = vmatmul.mubr.msk.f32.vlgmr.msra.gmra.mrb[0].mxu0 %vm124_vm1, %v3531_v54 }
 0x16f   :  { %3007 = vmatprep.mubr.msk.f32.mxu0 %vm3355_vm2, %v3354_v55 }
 0x241   :  { %v2984_v57 = vpop.f32.mrb[0].mxu0 }
 0x242   :  { %v3544_v58 = vadd.f32 %v2984_v57, %v2784_v56  ;;  %v274_v59 = vpop.f32.mrb[1].mxu0 }
 0x243   :  { %v3546_v60 = vadd.f32 %v2784_v56, %v274_v59 }
 0x244   :  { %362 = vrot.lane.b32.xlu1 %v3544_v58, %s3356_s13 }
 0x245   :  { %284 = vrot.lane.b32.xlu0 %v3546_v60, %s3356_s13 }
 0x2b6   :  { %v363_v62 = vpop.permute.xlu1 %362 }
 0x2b7   :  { %v285_v61 = vpop.permute.xlu0 %284 }
 0x2b8   :  { %2986 = vmatpush3.xpose.msk.msra.mxu1 %vm286_vm3, %v285_v61 }
 0x2b9   :  { %2990 = vmatprep.subr.mxu1 %v3354_v55 }
 0x2bb   :  { %2988 = vmatmul.mubr.msk.f32.vlgmr.msra.gmra.mrb[0].mxu1 %vm286_vm3, %v3546_v60 }
 0x2bc   :  { %2991 = vmatpush3.xpose.msk.msra.mxu1 %vm286_vm3, %v363_v62  ;;  %2992 = vmatprep.mubr.msk.f32.mxu1 %vm3355_vm2, %v3354_v55 }
 0x2bd   :  { %2995 = vmatprep.subr.mxu1 %v3354_v55 }
 0x2bf   :  { %2993 = vmatmul.mubr.msk.f32.vlgmr.msra.gmra.mrb[2].mxu1 %vm286_vm3, %v3544_v58 }
 0x2c0   :  { %2997 = vmatprep.mubr.msk.f32.mxu1 %vm3355_vm2, %v3354_v55 }
 0x38e   :  { %v357_v15 = vpop.f32.mrb[0].mxu1 }
 0x38f   :  { %v438_v16 = vmul.f32 0.25, %v357_v15  ;;  %v2989_v17 = vpop.f32.mrb[1].mxu1 }
 0x391   :  { %v452_v18 = vadd.f32 %v3567_v13, %v438_v16 }
 0x392   :  { %v434_v20 = vpop.f32.mrb[2].mxu1 }
 0x393   :  { %v439_v21 = vmul.f32 0.25, %v434_v20  ;;  %v2994_v22 = vpop.f32.mrb[3].mxu1  ;;  %v455_v23 = vsel %vm454_vm4, %v452_v18, -inf }
 0x394   :  { %456 = vmax.xlane.f32.xlu1 %v455_v23  ;;  %v2799_v22 = vld [vmem:[%s3925_s7 + $0x10] sm:$0xff] }
 0x395   :  { %v453_v24 = vadd.f32 %v3570_v19, %v439_v21 }
 0x397   :  { %v458_v25 = vsel %vm454_vm4, %v453_v24, -inf }
 0x398   :  { %459 = vmax.xlane.f32.xlu0 %v458_v25  ;;  %v630_v25 = vld [vmem:[%s3925_s7 + $0x8] sm:$0xff] }
 0x3a5   :  { %553 = vrot.lane.b32.xlu1 %v3544_v58, %s3358_s1 }
 0x3a9   :  { %633 = vrot.lane.b32.xlu1 %v3546_v60, %s3359_s11 }
 0x3ad   :  { %711 = vrot.lane.b32.xlu1 %v3544_v58, %s3359_s11 }
 0x421   :  { %v457_v26 = vpop.xlane.xlu1 %456 }
 0x422   :  { %v461_v27 = vsub.f32 %v452_v18, %v457_v26 }
 0x424   :  { %v463_v28 = vmul.f32 1.442695, %v461_v27 }
 0x425   :  { %v554_v29 = vpop.permute.xlu1 %553  ;;  %v460_v30 = vpop.xlane.xlu0 %459 }
 0x426   :  { %3279 = vpow2.f32 %v463_v28  ;;  %v462_v31 = vsub.f32 %v453_v24, %v460_v30  ;;  %v629_v24 = vld [vmem:[%s3925_s7] sm:$0xff] }
 0x427   :  { %v3187_v26 = vpack.c.bf16 %v630_v25, %v629_v24 }
 0x428   :  { %v465_v32 = vmul.f32 1.442695, %v462_v31  ;;  %v2805_v31 = vld [vmem:[%s3923_s5 + $0x1] ss:$0 sm:$0xff] }
 0x429   :  { %v634_v33 = vpop.permute.xlu1 %633 }
 0x42a   :  { %3281 = vpow2.f32 %v465_v32  ;;  %3006 = vmatpush3.xpose.msk.msra.mxu0 %vm286_vm3, %v634_v33 }
 0x42b   :  { %3015 = vmatprep.subr.mxu0 %v3354_v55 }
 0x42d   :  { %v712_v38 = vpop.permute.xlu1 %711 }
 0x430   :  { %v3280_v34 = vpop.eup %3279 }
 0x431   :  { %v467_v35 = vsel %vm454_vm4, %v3280_v34, 0.0 }
 0x432   :  { %468 = vadd.xlane.f32.xlu0 %v467_v35 }
 0x434   :  { %v3282_v36 = vpop.eup %3281 }
 0x435   :  { %v470_v37 = vsel %vm454_vm4, %v3282_v36, 0.0 }
 0x436   :  { %471 = vadd.xlane.f32.xlu1 %v470_v37 }
 0x447   :  { %709 = vrot.lane.b32.xlu1 %v3544_v58, %s3360_s25 }
 0x448   :  { %477 = vrot.lane.b32.xlu0 %v3546_v60, %s3358_s1 }
 0x44c   :  { %631 = vrot.lane.b32.xlu0 %v3546_v60, %s3360_s25 }
 0x4bf   :  { %v469_v39 = vpop.xlane.xlu0 %468 }
 0x4c0   :  { %3283 = vrcp.f32 %v469_v39 }
 0x4c3   :  { %v472_v40 = vpop.xlane.xlu1 %471  ;;  %v478_v41 = vpop.permute.xlu0 %477 }
 0x4c4   :  { %3285 = vrcp.f32 %v472_v40  ;;  %2996 = vmatpush3.msra.mxu1 %v478_v41 }
 0x4c5   :  { %3000 = vmatprep.subr.mxu1 %v3354_v55 }
 0x4c7   :  { %v632_v42 = vpop.permute.xlu0 %631  ;;  %v710_v47 = vpop.permute.xlu1 %709 }
 0x4c8   :  { %3008 = vmatmul.mubr.msk.f32.vlgmr.msra.gmra.mrb[2].mxu0 %vm286_vm3, %v632_v42 }
 0x4c9   :  { %3017 = vmatprep.mubr.msk.f32.mxu0 %vm3355_vm2, %v3354_v55 }
 0x4ca   :  { %v3284_v43 = vpop.eup %3283 }
 0x4cb   :  { %v474_v44 = vmul.f32 %v3284_v43, %v3280_v34 }
 0x4cd   :  { %2998 = vmatmul.mubr.msk.f32.vlgmr.msra.gmra.mrb[4].mxu1 %vm454_vm4, %v474_v44 }
 0x4ce   :  { %v3286_v45 = vpop.eup %3285  ;;  %3001 = vmatpush3.msra.mxu1 %v554_v29  ;;  %3002 = vmatprep.mubr.msk.f32.mxu1 %vm3355_vm2, %v3354_v55 }
 0x4cf   :  { %v476_v46 = vmul.f32 %v3286_v45, %v3282_v36  ;;  %3010 = vmatprep.subr.mxu1 %v3354_v55 }
 0x4d1   :  { %3003 = vmatmul.mubr.msk.f32.vlgmr.msra.gmra.mrb[6].mxu1 %vm454_vm4, %v476_v46 }
 0x4d2   :  { %3012 = vmatprep.mubr.msk.f32.mxu1 %vm3355_vm2, %v3354_v55 }
 0x4d5   :  { %3011 = vmatpush3.xpose.msk.msra.mxu1 %vm286_vm3, %v712_v38 }
 0x4d6   :  { %3020 = vmatprep.subr.mxu1 %v3354_v55 }
 0x4d8   :  { %3013 = vmatmul.mubr.msk.f32.vlgmr.msra.gmra.mrb[8].mxu1 %vm286_vm3, %v710_v47 }
 0x4d9   :  { %3022 = vmatprep.mubr.msk.f32.mxu1 %vm3355_vm2, %v3354_v55 }
 0x59b   :  { %v705_v48 = vpop.f32.mrb[2].mxu0 }
 0x59c   :  { %v787_v49 = vmul.f32 0.25, %v705_v48  ;;  %v3009_v51 = vpop.f32.mrb[3].mxu0 }
 0x59e   :  { %v789_v52 = vadd.f32 %v787_v49, %v3567_v13  ;;  %v1180_v49 = vld [vmem:[%s3938_s14 + $0x8] sm:$0xff] }
 0x5a0   :  { %v549_v53 = vpop.f32.mrb[4].mxu1  ;;  %v791_v56 = vsel %vm454_vm4, %v789_v52, -inf }
 0x5a1   :  { %792 = vmax.xlane.f32.xlu0 %v791_v56  ;;  %v2999_v57 = vpop.f32.mrb[5].mxu1 }
 0x5a4   :  { %v625_v59 = vpop.f32.mrb[6].mxu1 }
 0x5a5   :  { %v3004_v61 = vpop.f32.mrb[7].mxu1 }
 0x5ab   :  { %v783_v62 = vpop.f32.mrb[8].mxu1 }
 0x5ac   :  { %v788_v63 = vmul.f32 0.25, %v783_v62  ;;  %v3014_v0 = vpop.f32.mrb[9].mxu1 }
 0x5ae   :  { %v790_v1 = vadd.f32 %v788_v63, %v3570_v19 }
 0x5b0   :  { %v794_v2 = vsel %vm454_vm4, %v790_v1, -inf }
 0x5b1   :  { %795 = vmax.xlane.f32.xlu1 %v794_v2  ;;  %v2806_v2 = vld [vmem:[%s3923_s5 + $0x2] ss:$0 sm:$0xff] }
 0x5c2   :  { %889 = vrot.lane.b32.xlu1 %v3544_v58, %s3361_s26 }
 0x62e   :  { %v793_v3 = vpop.xlane.xlu0 %792 }
 0x62f   :  { %v797_v4 = vsub.f32 %v789_v52, %v793_v3  ;;  %v1181_v52 = vld [vmem:[%s3938_s14 + $0x10] sm:$0xff] }
 0x631   :  { %v799_v5 = vmul.f32 1.442695, %v797_v4 }
 0x633   :  { %3287 = vpow2.f32 %v799_v5 }
 0x63d   :  { %v3288_v6 = vpop.eup %3287 }
 0x63e   :  { %v796_v7 = vpop.xlane.xlu1 %795  ;;  %v803_v8 = vsel %vm454_vm4, %v3288_v6, 0.0 }
 0x63f   :  { %v798_v9 = vsub.f32 %v790_v1, %v796_v7  ;;  %804 = vadd.xlane.f32.xlu0 %v803_v8 }
 0x641   :  { %v801_v10 = vmul.f32 1.442695, %v798_v9 }
 0x642   :  { %v890_v11 = vpop.permute.xlu1 %889 }
 0x643   :  { %3289 = vpow2.f32 %v801_v10  ;;  %3021 = vmatpush3.msra.mxu1 %v890_v11  ;;  %v1287_v11 = vld [vmem:[%s3939_s3] sm:$0xff] }
 0x64d   :  { %v3290_v12 = vpop.eup %3289 }
 0x64e   :  { %v806_v14 = vsel %vm454_vm4, %v3290_v12, 0.0 }
 0x64f   :  { %807 = vadd.xlane.f32.xlu0 %v806_v14 }
 0x665   :  { %813 = vrot.lane.b32.xlu0 %v3546_v60, %s3361_s26  ;;  %v2800_v60 = vld [vmem:[%s3925_s7 + $0x18] sm:$0xff] }
 0x666   :  { %v3183_v23 = vpack.c.bf16 %v2800_v60, %v2799_v22  ;;  %v1294_v22 = vld [vmem:[%s3939_s3 + $0x38] sm:$0xff] }
 0x6cc   :  { %v805_v58 = vpop.xlane.xlu0 %804 }
 0x6cd   :  { %3291 = vrcp.f32 %v805_v58  ;;  %v1289_v58 = vld [vmem:[%s3939_s3 + $0x10] sm:$0xff] }
 0x6d7   :  { %v3292_v16 = vpop.eup %3291 }
 0x6d8   :  { %v810_v17 = vmul.f32 %v3292_v16, %v3288_v6  ;;  %v2807_v6 = vld [vmem:[%s3923_s5 + $0x3] ss:$0 sm:$0xff] }
 0x6dc   :  { %v808_v15 = vpop.xlane.xlu0 %807 }
 0x6dd   :  { %3293 = vrcp.f32 %v808_v15  ;;  %v1290_v15 = vld [vmem:[%s3939_s3 + $0x18] sm:$0xff] }
 0x6de   :  { %v3203_v16 = vpack.c.bf16 %v1290_v15, %v1289_v58 }
 0x6e0   :  { %v814_v18 = vpop.permute.xlu0 %813 }
 0x6e1   :  { %3016 = vmatpush3.msra.mxu0 %v814_v18  ;;  %v1292_v18 = vld [vmem:[%s3939_s3 + $0x28] sm:$0xff] }
 0x6e2   :  { %3018 = vmatmul.mubr.msk.f32.vlgmr.msra.gmra.mrb[4].mxu0 %vm454_vm4, %v810_v17  ;;  %3184 = vmatprep.subr.bf16.mxu0 %v3183_v23  ;;  %v1291_v17 = vld [vmem:[%s3939_s3 + $0x20] sm:$0xff] }
 0x6e3   :  { %3186 = vmatpush3.bf16.msra.mxu0 %v3183_v23  ;;  %v2808_v23 = vld [vmem:[%s3923_s5 + $0x4] ss:$0 sm:$0xff] }
 0x6e4   :  { %3188 = vmatprep.subr.bf16.mxu0 %v3187_v26 }
 0x6e7   :  { %v3294_v20 = vpop.eup %3293 }
 0x6e8   :  { %v812_v21 = vmul.f32 %v3294_v20, %v3290_v12  ;;  %v1288_v12 = vld [vmem:[%s3939_s3 + $0x8] sm:$0xff]  ;;  %v3207_v20 = vpack.c.bf16 %v1292_v18, %v1291_v17  ;;  %v2814_v17 = vld [vmem:[%s3923_s5 + $0x6] ss:$0 sm:$0xff] }
 0x6e9   :  { %v3199_v14 = vpack.c.bf16 %v1288_v12, %v1287_v11 }
 0x6ea   :  { %3023 = vmatmul.mubr.msk.f32.vlgmr.msra.gmra.mrb[10].mxu1 %vm454_vm4, %v812_v21  ;;  %v1293_v21 = vld [vmem:[%s3939_s3 + $0x30] sm:$0xff] }
 0x6eb   :  { %v3211_v60 = vpack.c.bf16 %v1294_v22, %v1293_v21  ;;  %v2815_v22 = vld [vmem:[%s3923_s5 + $0x7] ss:$0 sm:$0xff] }
 0x7b5   :  { %v885_v27 = vpop.f32.mrb[4].mxu0 }
 0x7b6   :  { %v3019_v28 = vpop.f32.mrb[5].mxu0  ;;  %3029 = vmatprep.mubr.msk.f32.mxu0 %vm286_vm3, %v885_v27 }
 0x7bd   :  { %v961_v29 = vpop.f32.mrb[10].mxu1 }
 0x7be   :  { %v3024_v30 = vpop.f32.mrb[11].mxu1  ;;  %3030 = vmatmul.mubr.msk.f32.vlgmr.msra.gmra.mrb[6].mxu0 %vm286_vm3, %v961_v29 }
 0x7bf   :  { %3190 = vmatpush3.bf16.msra.mxu0 %v3187_v26  ;;  %3036 = vmatprep.mubr.msk.f32.mxu0 %vm286_vm3, %v549_v53  ;;  %v1182_v53 = vld [vmem:[%s3938_s14 + $0x18] sm:$0xff] }
 0x7c0   :  { %v3195_v56 = vpack.c.bf16 %v1182_v53, %v1181_v52  ;;  %3200 = vmatprep.subr.bf16.mxu0 %v3199_v14 }
 0x7c6   :  { %3037 = vmatmul.mubr.msk.f32.vlgmr.msra.gmra.mrb[6].mxu0 %vm286_vm3, %v625_v59 }
 0x7c7   :  { %3202 = vmatpush3.bf16.msra.mxu0 %v3199_v14 }
 0x7c8   :  { %3204 = vmatprep.subr.bf16.mxu0 %v3203_v16 }
 0x7cb   :  { %3206 = vmatpush3.bf16.msra.mxu0 %v3203_v16 }
 0x7cc   :  { %3208 = vmatprep.subr.bf16.mxu0 %v3207_v20 }
 0x7cf   :  { %3210 = vmatpush3.bf16.msra.mxu0 %v3207_v20 }
 0x7d0   :  { %3212 = vmatprep.subr.bf16.mxu0 %v3211_v60 }
 0x7d3   :  { %3214 = vmatpush3.bf16.msra.mxu0 %v3211_v60 }
 0x7d4   :  { %3090 = vmatprep.subr.mxu0 %v3354_v55 }
 0x899   :  { %v3038_v32 = vpop.f32.mrb[6].mxu0 }
 0x89a   :  { %v1136_v33 = vadd.f32 %v3038_v32, %v2805_v31  ;;  %v1121_v34 = vpop.f32.mrb[7].mxu0 }
 0x89b   :  { %v1135_v35 = vadd.f32 %v2805_v31, %v1121_v34 }
 0x89c   :  { %v1138_v36 = vadd.f32 %v1136_v33, %v3531_v54 }
 0x89d   :  { %v1137_v37 = vadd.f32 %v1135_v35, %v3527_v50  ;;  %v1179_v50 = vld [vmem:[%s3938_s14] sm:$0xff] }
 0x89e   :  { %v1144_v38 = vsel %vm124_vm1, %v1138_v36, 0.0  ;;  %v3191_v51 = vpack.c.bf16 %v1180_v49, %v1179_v50 }
 0x89f   :  { %1145 = vadd.xlane.f32.xlu0 %v1144_v38  ;;  %v1141_v39 = vsel %vm124_vm1, %v1137_v37, 0.0 }
 0x8a0   :  { %1142 = vadd.xlane.f32.xlu1 %v1141_v39  ;;  %3192 = vmatprep.subr.bf16.mxu1 %v3191_v51 }
 0x8a1   :  { %3194 = vmatpush3.bf16.msra.mxu1 %v3191_v51 }
 0x8a2   :  { %3196 = vmatprep.subr.bf16.mxu1 %v3195_v56 }
 0x8a5   :  { %3198 = vmatpush3.bf16.msra.mxu1 %v3195_v56 }
 0x92c   :  { %v1146_v40 = vpop.xlane.xlu0 %1145 }
 0x92d   :  { %v1148_v41 = vmul.f32 0.03125, %v1146_v40  ;;  %v1143_v42 = vpop.xlane.xlu1 %1142 }
 0x92e   :  { %v1147_v43 = vmul.f32 0.03125, %v1143_v42 }
 0x92f   :  { %v1150_v44 = vsub.f32 %v1138_v36, %v1148_v41 }
 0x930   :  { %v1149_v45 = vsub.f32 %v1137_v37, %v1147_v43 }
 0x931   :  { %v1152_v46 = vmul.f32 %v1150_v44, %v1150_v44 }
 0x932   :  { %v1151_v47 = vmul.f32 %v1149_v45, %v1149_v45 }
 0x933   :  { %v1156_v48 = vsel %vm124_vm1, %v1152_v46, 0.0  ;;  %v2811_v46 = vld [vmem:[%s3923_s5 + $0x5] ss:$0 sm:$0xff] }
 0x934   :  { %1157 = vadd.xlane.f32.xlu1 %v1156_v48  ;;  %v1153_v54 = vsel %vm124_vm1, %v1151_v47, 0.0 }
 0x935   :  { %1154 = vadd.xlane.f32.xlu0 %v1153_v54 }
 0x9c1   :  { %v1158_v57 = vpop.xlane.xlu1 %1157 }
 0x9c2   :  { %v1160_v59 = vmul.f32 0.03125, %v1158_v57  ;;  %v1155_v61 = vpop.xlane.xlu0 %1154 }
 0x9c3   :  { %v1159_v62 = vmul.f32 0.03125, %v1155_v61 }
 0x9c4   :  { %v1162_v63 = vadd.f32 1e-12, %v1160_v59 }
 0x9c5   :  { %v1161_v0 = vadd.f32 1e-12, %v1159_v62 }
 0x9c6   :  { %3295 = vrsqrt.f32 %v1162_v63 }
 0x9c7   :  { %3297 = vrsqrt.f32 %v1161_v0 }
 0x9d0   :  { %v3296_v1 = vpop.eup %3295 }
 0x9d1   :  { %v3298_v3 = vpop.eup %3297  ;;  %v1166_v4 = vmul.f32 %v3296_v1, %v1150_v44 }
 0x9d2   :  { %v1165_v5 = vmul.f32 %v3298_v3, %v1149_v45 }
 0x9d3   :  { %v1172_v7 = vmul.f32 %v2806_v2, %v1166_v4  ;;  %v2816_v4 = vld [vmem:[%s3924_s6 + $0x20] sm:$0xff] }
 0x9d4   :  { %v1171_v8 = vmul.f32 %v2806_v2, %v1165_v5  ;;  %v2817_v5 = vld [vmem:[%s3924_s6 + $0x28] sm:$0xff] }
 0x9d5   :  { %v1178_v10 = vadd.f32 %v2807_v6, %v1172_v7  ;;  %v2818_v7 = vld [vmem:[%s3924_s6 + $0x30] sm:$0xff] }
 0x9d6   :  { %v1177_v9 = vadd.f32 %v2807_v6, %v1171_v8  ;;  %v3215_v6 = vpack.c.bf16 %v2817_v5, %v2816_v4  ;;  %v2819_v8 = vld [vmem:[%s3924_s6 + $0x38] sm:$0xff] }
 0x9d8   :  { %3047 = vmatprep.mubr.msk.f32.mxu1 %vm124_vm1, %v1177_v9  ;;  %3216 = vmatprep.subr.bf16.mxu1 %v3215_v6 }
 0x9d9   :  { %3048 = vmatmul.mubr.msk.f32.vlgmr.msra.gmra.mrb[12].mxu1 %vm124_vm1, %v1178_v10 }
 0x9da   :  { %3218 = vmatpush3.bf16.msra.mxu1 %v3215_v6 }
 0xaac   :  { %v3049_v24 = vpop.f32.mrb[12].mxu1 }
 0xaad   :  { %v1266_v25 = vadd.f32 %v3049_v24, %v2808_v23  ;;  %v1260_v26 = vpop.f32.mrb[13].mxu1 }
 0xaae   :  { %v1261_v27 = vadd.f32 %v2808_v23, %v1260_v26  ;;  %v2821_v26 = vld [vmem:[%s3923_s5 + $0x8] ss:$0 sm:$0xff] }
 0xaaf   :  { %v1270_v28 = vmul.f32 %v1266_v25, %v1266_v25 }
 0xab0   :  { %v1269_v29 = vmul.f32 %v1261_v27, %v1261_v27 }
 0xab1   :  { %v1272_v30 = vmul.f32 %v1270_v28, %v1266_v25 }
 0xab2   :  { %v1271_v31 = vmul.f32 %v1269_v29, %v1261_v27 }
 0xab3   :  { %v1274_v32 = vmul.f32 0.044715, %v1272_v30 }
 0xab4   :  { %v1273_v33 = vmul.f32 0.044715, %v1271_v31 }
 0xab5   :  { %v1276_v34 = vadd.f32 %v1274_v32, %v1266_v25 }
 0xab6   :  { %v1275_v35 = vadd.f32 %v1273_v33, %v1261_v27 }
 0xab7   :  { %v1278_v36 = vmul.f32 0.7978846, %v1276_v34 }
 0xab8   :  { %v1277_v37 = vmul.f32 0.7978846, %v1275_v35 }
 0xab9   :  { %3299 = vtanh.f32 %v1278_v36 }
 0xaba   :  { %3301 = vtanh.f32 %v1277_v37 }
 0xac3   :  { %v3300_v38 = vpop.eup %3299 }
 0xac4   :  { %v3302_v39 = vpop.eup %3301  ;;  %v1282_v40 = vadd.f32 1.0, %v3300_v38 }
 0xac5   :  { %v1281_v41 = vadd.f32 1.0, %v3302_v39 }
 0xac6   :  { %v1284_v42 = vmul.f32 0.5, %v1282_v40 }
 0xac7   :  { %v1283_v43 = vmul.f32 0.5, %v1281_v41 }
 0xac8   :  { %v1286_v45 = vmul.f32 %v1284_v42, %v1266_v25 }
 0xac9   :  { %v1285_v44 = vmul.f32 %v1283_v43, %v1261_v27 }
 0xacb   :  { %3066 = vmatprep.mubr.msk.f32.mxu0 %vm1300_vm5, %v1285_v44 }
 0xacc   :  { %3067 = vmatmul.mubr.msk.f32.vlgmr.msra.gmra.mrb[8].mxu0 %vm1300_vm5, %v1286_v45 }
 0xacd   :  { %3092 = vmatprep.mubr.msk.f32.mxu0 %vm3355_vm2, %v3354_v55 }
 0xb9f   :  { %v3068_v47 = vpop.f32.mrb[8].mxu0 }
 0xba0   :  { %v1379_v48 = vadd.f32 %v3068_v47, %v2811_v46  ;;  %v1373_v54 = vpop.f32.mrb[9].mxu0 }
 0xba1   :  { %v1374_v50 = vadd.f32 %v2811_v46, %v1373_v54 }
 0xba2   :  { %v1383_v49 = vadd.f32 %v1379_v48, %v1178_v10 }
 0xba3   :  { %v1382_v51 = vadd.f32 %v1374_v50, %v1177_v9  ;;  %v3219_v9 = vpack.c.bf16 %v2819_v8, %v2818_v7 }
 0xba4   :  { %v1389_v52 = vsel %vm124_vm1, %v1383_v49, 0.0 }
 0xba5   :  { %1390 = vadd.xlane.f32.xlu1 %v1389_v52  ;;  %v1386_v53 = vsel %vm124_vm1, %v1382_v51, 0.0  ;;  %3220 = vmatprep.subr.bf16.mxu1 %v3219_v9 }
 0xba6   :  { %1387 = vadd.xlane.f32.xlu0 %v1386_v53  ;;  %3222 = vmatpush3.bf16.msra.mxu1 %v3219_v9 }
 0xba7   :  { %3080 = vmatprep.subr.mxu1 %v3354_v55 }
 0xc32   :  { %v1391_v56 = vpop.xlane.xlu1 %1390 }
 0xc33   :  { %v1393_v57 = vmul.f32 0.03125, %v1391_v56  ;;  %v1388_v59 = vpop.xlane.xlu0 %1387 }
 0xc34   :  { %v1392_v61 = vmul.f32 0.03125, %v1388_v59 }
 0xc35   :  { %v1395_v62 = vsub.f32 %v1383_v49, %v1393_v57 }
 0xc36   :  { %v1394_v63 = vsub.f32 %v1382_v51, %v1392_v61 }
 0xc37   :  { %v1397_v0 = vmul.f32 %v1395_v62, %v1395_v62 }
 0xc38   :  { %v1396_v1 = vmul.f32 %v1394_v63, %v1394_v63 }
 0xc39   :  { %v1401_v2 = vsel %vm124_vm1, %v1397_v0, 0.0 }
 0xc3a   :  { %1402 = vadd.xlane.f32.xlu1 %v1401_v2  ;;  %v1398_v3 = vsel %vm124_vm1, %v1396_v1, 0.0 }
 0xc3b   :  { %1399 = vadd.xlane.f32.xlu0 %v1398_v3 }
 0xcc7   :  { %v1403_v10 = vpop.xlane.xlu1 %1402 }
 0xcc8   :  { %v1405_v11 = vmul.f32 0.03125, %v1403_v10  ;;  %v1400_v12 = vpop.xlane.xlu0 %1399 }
 0xcc9   :  { %v1404_v14 = vmul.f32 0.03125, %v1400_v12 }
 0xcca   :  { %v1407_v58 = vadd.f32 1e-12, %v1405_v11 }
 0xccb   :  { %v1406_v15 = vadd.f32 1e-12, %v1404_v14 }
 0xccc   :  { %3303 = vrsqrt.f32 %v1407_v58 }
 0xccd   :  { %3305 = vrsqrt.f32 %v1406_v15 }
 0xcd6   :  { %v3304_v16 = vpop.eup %3303 }
 0xcd7   :  { %v3306_v18 = vpop.eup %3305  ;;  %v1411_v20 = vmul.f32 %v3304_v16, %v1395_v62 }
 0xcd8   :  { %v1410_v21 = vmul.f32 %v3306_v18, %v1394_v63 }
 0xcd9   :  { %v1417_v60 = vmul.f32 %v2814_v17, %v1411_v20 }
 0xcda   :  { %v1416_v23 = vmul.f32 %v2814_v17, %v1410_v21 }
 0xcdb   :  { %v3724_v25 = vadd.f32 %v2815_v22, %v1417_v60 }
 0xcdc   :  { %v3722_v24 = vadd.f32 %v2815_v22, %v1416_v23 }
 0xcde   :  { %3077 = vmatprep.mubr.msk.f32.mxu1 %vm124_vm1, %v3722_v24 }
 0xcdf   :  { %3078 = vmatmul.mubr.msk.f32.vlgmr.msra.gmra.mrb[14].mxu1 %vm124_vm1, %v3724_v25 }
 0xce0   :  { %3082 = vmatprep.mubr.msk.f32.mxu1 %vm3355_vm2, %v3354_v55 }
 0xdb2   :  { %v3079_v27 = vpop.f32.mrb[14].mxu1 }
 0xdb3   :  { %v3735_v28 = vadd.f32 %v3079_v27, %v2821_v26  ;;  %v1507_v29 = vpop.f32.mrb[15].mxu1 }
 0xdb4   :  { %v3737_v30 = vadd.f32 %v2821_v26, %v1507_v29 }
 0xdb5   :  { %1594 = vrot.lane.b32.xlu1 %v3735_v28, %s3356_s13 }
 0xdb6   :  { %1517 = vrot.lane.b32.xlu0 %v3737_v30, %s3356_s13 }
 0xe27   :  { %v1595_v32 = vpop.permute.xlu1 %1594 }
 0xe28   :  { %v1518_v31 = vpop.permute.xlu0 %1517 }
 0xe29   :  { %3081 = vmatpush3.xpose.msk.msra.mxu1 %vm286_vm3, %v1518_v31 }
 0xe2a   :  { %3085 = vmatprep.subr.mxu1 %v3354_v55 }
 0xe2c   :  { %3083 = vmatmul.mubr.msk.f32.vlgmr.msra.gmra.mrb[16].mxu1 %vm286_vm3, %v3737_v30 }
 0xe2d   :  { %3086 = vmatpush3.xpose.msk.msra.mxu1 %vm286_vm3, %v1595_v32  ;;  %3087 = vmatprep.mubr.msk.f32.mxu1 %vm3355_vm2, %v3354_v55 }
 0xe2e   :  { %3095 = vmatprep.subr.mxu1 %v3354_v55 }
 0xe30   :  { %3088 = vmatmul.mubr.msk.f32.vlgmr.msra.gmra.mrb[18].mxu1 %vm286_vm3, %v3735_v28 }
 0xe31   :  { %3097 = vmatprep.mubr.msk.f32.mxu1 %vm3355_vm2, %v3354_v55 }
 0xeff   :  { %v1589_v33 = vpop.f32.mrb[16].mxu1 }
 0xf00   :  { %v1670_v34 = vmul.f32 0.25, %v1589_v33  ;;  %v3084_v35 = vpop.f32.mrb[17].mxu1 }
 0xf02   :  { %v1672_v36 = vadd.f32 %v1670_v34, %v3567_v13 }
 0xf03   :  { %v1666_v37 = vpop.f32.mrb[18].mxu1 }
 0xf04   :  { %v1671_v38 = vmul.f32 0.25, %v1666_v37  ;;  %v3089_v39 = vpop.f32.mrb[19].mxu1  ;;  %v1674_v40 = vsel %vm454_vm4, %v1672_v36, -inf  ;;  %v2838_v37 = vld [vmem:[%s3925_s7 + $0x30] sm:$0xff] }
 0xf05   :  { %1675 = vmax.xlane.f32.xlu1 %v1674_v40  ;;  %v2830_v39 = vld [vmem:[%s3925_s7 + $0x20] sm:$0xff]  ;;  %v2831_v40 = vld [vmem:[%s3925_s7 + $0x28] sm:$0xff] }
 0xf06   :  { %v1673_v41 = vadd.f32 %v1671_v38, %v3570_v19 }
 0xf08   :  { %v1677_v42 = vsel %vm454_vm4, %v1673_v41, -inf }
 0xf09   :  { %1678 = vmax.xlane.f32.xlu0 %v1677_v42 }
 0xf16   :  { %1772 = vrot.lane.b32.xlu1 %v3735_v28, %s3358_s1 }
 0xf1a   :  { %1853 = vrot.lane.b32.xlu1 %v3737_v30, %s3359_s11 }
 0xf1e   :  { %1931 = vrot.lane.b32.xlu1 %v3735_v28, %s3359_s11 }
 0xf1f   :  { %1696 = vrot.lane.b32.xlu0 %v3737_v30, %s3358_s1  ;;  %s3941_s1 = sld [smem:[#allocation9_spill]] }
 0xf92   :  { %v1676_v43 = vpop.xlane.xlu1 %1675 }
 0xf93   :  { %v1680_v44 = vsub.f32 %v1672_v36, %v1676_v43 }
 0xf95   :  { %v1682_v45 = vmul.f32 1.442695, %v1680_v44 }
 0xf96   :  { %v1773_v46 = vpop.permute.xlu1 %1772  ;;  %v1679_v47 = vpop.xlane.xlu0 %1678 }
 0xf97   :  { %3307 = vpow2.f32 %v1682_v45  ;;  %v1681_v48 = vsub.f32 %v1673_v41, %v1679_v47  ;;  %3096 = vmatpush3.msra.mxu1 %v1773_v46  ;;  %v3227_v41 = vpack.c.bf16 %v2831_v40, %v2830_v39  ;;  %v2845_v46 = vld [vmem:[%s3923_s5 + $0x9] ss:$0 sm:$0xff] }
 0xf98   :  { %3105 = vmatprep.subr.mxu1 %v3354_v55 }
 0xf99   :  { %v1684_v54 = vmul.f32 1.442695, %v1681_v48 }
 0xf9a   :  { %v1697_v50 = vpop.permute.xlu0 %1696  ;;  %v1854_v56 = vpop.permute.xlu1 %1853 }
 0xf9b   :  { %3309 = vpow2.f32 %v1684_v54  ;;  %3091 = vmatpush3.msra.mxu0 %v1697_v50 }
 0xf9c   :  { %3100 = vmatprep.subr.mxu0 %v3354_v55 }
 0xf9e   :  { %v1932_v57 = vpop.permute.xlu1 %1931 }
 0xfa1   :  { %v3308_v49 = vpop.eup %3307 }
 0xfa2   :  { %v1686_v51 = vsel %vm454_vm4, %v3308_v49, 0.0 }
 0xfa3   :  { %1687 = vadd.xlane.f32.xlu0 %v1686_v51 }
 0xfa5   :  { %v3310_v52 = vpop.eup %3309 }
 0xfa6   :  { %v1689_v53 = vsel %vm454_vm4, %v3310_v52, 0.0 }
 0xfa7   :  { %1690 = vadd.xlane.f32.xlu1 %v1689_v53 }
 0xfb8   :  { %1929 = vrot.lane.b32.xlu1 %v3735_v28, %s3360_s25 }
 0xfb9   :  { %1851 = vrot.lane.b32.xlu0 %v3737_v30, %s3360_s25 }
0x1030   :  { %v1688_v59 = vpop.xlane.xlu0 %1687 }
0x1031   :  { %3311 = vrcp.f32 %v1688_v59 }
0x1034   :  { %v1691_v61 = vpop.xlane.xlu1 %1690  ;;  %v1852_v2 = vpop.permute.xlu0 %1851 }
0x1035   :  { %3313 = vrcp.f32 %v1691_v61 }
0x1038   :  { %v1930_v3 = vpop.permute.xlu1 %1929 }
0x103b   :  { %v3312_v62 = vpop.eup %3311 }
0x103c   :  { %v1693_v63 = vmul.f32 %v3312_v62, %v3308_v49 }
0x103e   :  { %3093 = vmatmul.mubr.msk.f32.vlgmr.msra.gmra.mrb[10].mxu0 %vm454_vm4, %v1693_v63 }
0x103f   :  { %v3314_v0 = vpop.eup %3313  ;;  %3101 = vmatpush3.xpose.msk.msra.mxu0 %vm286_vm3, %v1854_v56  ;;  %3102 = vmatprep.mubr.msk.f32.mxu0 %vm3355_vm2, %v3354_v55 }
0x1040   :  { %v1695_v1 = vmul.f32 %v3314_v0, %v3310_v52  ;;  %3110 = vmatprep.subr.mxu0 %v3354_v55 }
0x1042   :  { %3098 = vmatmul.mubr.msk.f32.vlgmr.msra.gmra.mrb[20].mxu1 %vm454_vm4, %v1695_v1  ;;  %3103 = vmatmul.mubr.msk.f32.vlgmr.msra.gmra.mrb[12].mxu0 %vm286_vm3, %v1852_v2 }
0x1043   :  { %3106 = vmatpush3.xpose.msk.msra.mxu1 %vm286_vm3, %v1932_v57  ;;  %3107 = vmatprep.mubr.msk.f32.mxu1 %vm3355_vm2, %v3354_v55 }
0x1044   :  { %3115 = vmatprep.subr.mxu1 %v3354_v55  ;;  %3112 = vmatprep.mubr.msk.f32.mxu0 %vm3355_vm2, %v3354_v55 }
0x1046   :  { %3108 = vmatmul.mubr.msk.f32.vlgmr.msra.gmra.mrb[22].mxu1 %vm286_vm3, %v1930_v3  ;;  %v2851_v3 = vld [vmem:[%s3938_s14 + $0x28] sm:$0xff] }
0x1047   :  { %3117 = vmatprep.mubr.msk.f32.mxu1 %vm3355_vm2, %v3354_v55 }
0x1111   :  { %v1768_v4 = vpop.f32.mrb[10].mxu0 }
0x1112   :  { %v3094_v5 = vpop.f32.mrb[11].mxu0 }
0x1113   :  { %v2852_v5 = vld [vmem:[%s3938_s14 + $0x30] sm:$0xff] }
0x1115   :  { %v1844_v6 = vpop.f32.mrb[20].mxu1  ;;  %v1925_v7 = vpop.f32.mrb[12].mxu0 }
0x1116   :  { %v2007_v8 = vmul.f32 0.25, %v1925_v7  ;;  %v3099_v9 = vpop.f32.mrb[21].mxu1  ;;  %v3104_v10 = vpop.f32.mrb[13].mxu0 }
0x1118   :  { %v2009_v11 = vadd.f32 %v2007_v8, %v3567_v13 }
0x1119   :  { %v2003_v12 = vpop.f32.mrb[22].mxu1 }
0x111a   :  { %v2008_v14 = vmul.f32 0.25, %v2003_v12  ;;  %v3109_v58 = vpop.f32.mrb[23].mxu1  ;;  %v2011_v15 = vsel %vm454_vm4, %v2009_v11, -inf }
0x111b   :  { %2012 = vmax.xlane.f32.xlu0 %v2011_v15  ;;  %v2848_v15 = vld [vmem:[%s3923_s5 + $0xa] ss:$0 sm:$0xff] }
0x111c   :  { %v2010_v16 = vadd.f32 %v2008_v14, %v3570_v19 }
0x111e   :  { %v2014_v17 = vsel %vm454_vm4, %v2010_v16, -inf }
0x111f   :  { %2015 = vmax.xlane.f32.xlu1 %v2014_v17 }
0x1130   :  { %2109 = vrot.lane.b32.xlu1 %v3735_v28, %s3361_s26 }
0x11a8   :  { %v2013_v18 = vpop.xlane.xlu0 %2012 }
0x11a9   :  { %v2017_v20 = vsub.f32 %v2009_v11, %v2013_v18 }
0x11ab   :  { %v2019_v21 = vmul.f32 1.442695, %v2017_v20  ;;  %v2849_v20 = vld [vmem:[%s3923_s5 + $0xb] ss:$0 sm:$0xff] }
0x11ac   :  { %v2016_v22 = vpop.xlane.xlu1 %2015 }
0x11ad   :  { %3315 = vpow2.f32 %v2019_v21  ;;  %v2018_v13 = vsub.f32 %v2010_v16, %v2016_v22 }
0x11af   :  { %v2021_v60 = vmul.f32 1.442695, %v2018_v13 }
0x11b0   :  { %v2110_v23 = vpop.permute.xlu1 %2109 }
0x11b1   :  { %3317 = vpow2.f32 %v2021_v60  ;;  %3116 = vmatpush3.msra.mxu1 %v2110_v23  ;;  %v2858_v23 = vld [vmem:[%s3939_s3 + $0x40] sm:$0xff] }
0x11b7   :  { %v3316_v26 = vpop.eup %3315 }
0x11b8   :  { %v2023_v27 = vsel %vm454_vm4, %v3316_v26, 0.0 }
0x11b9   :  { %2024 = vadd.xlane.f32.xlu0 %v2023_v27 }
0x11bb   :  { %v3318_v19 = vpop.eup %3317 }
0x11bc   :  { %v2026_v29 = vsel %vm454_vm4, %v3318_v19, 0.0 }
0x11bd   :  { %2027 = vadd.xlane.f32.xlu0 %v2026_v29  ;;  %v2861_v29 = vld [vmem:[%s3939_s3 + $0x58] sm:$0xff] }
0x11d3   :  { %2033 = vrot.lane.b32.xlu0 %v3737_v30, %s3361_s26  ;;  %v2839_v30 = vld [vmem:[%s3925_s7 + $0x38] sm:$0xff] }
0x11d4   :  { %v3223_v38 = vpack.c.bf16 %v2839_v30, %v2838_v37 }
0x1246   :  { %v2025_v28 = vpop.xlane.xlu0 %2024 }
0x1247   :  { %3319 = vrcp.f32 %v2025_v28  ;;  %v2862_v28 = vld [vmem:[%s3939_s3 + $0x60] sm:$0xff] }
0x124a   :  { %v2028_v31 = vpop.xlane.xlu0 %2027 }
0x124b   :  { %3321 = vrcp.f32 %v2028_v31  ;;  %v2863_v31 = vld [vmem:[%s3939_s3 + $0x68] sm:$0xff] }
0x124e   :  { %v2034_v32 = vpop.permute.xlu0 %2033 }
0x124f   :  { %3111 = vmatpush3.msra.mxu0 %v2034_v32  ;;  %v3247_v32 = vpack.c.bf16 %v2863_v31, %v2862_v28 }
0x1250   :  { %3224 = vmatprep.subr.bf16.mxu0 %v3223_v38 }
0x1251   :  { %v3320_v33 = vpop.eup %3319 }
0x1252   :  { %v2030_v34 = vmul.f32 %v3320_v33, %v3316_v26  ;;  %v2859_v26 = vld [vmem:[%s3939_s3 + $0x48] sm:$0xff]  ;;  %v2864_v33 = vld [vmem:[%s3939_s3 + $0x70] sm:$0xff] }
0x1253   :  { %v3239_v27 = vpack.c.bf16 %v2859_v26, %v2858_v23 }
0x1254   :  { %3113 = vmatmul.mubr.msk.f32.vlgmr.msra.gmra.mrb[14].mxu0 %vm454_vm4, %v2030_v34  ;;  %v2865_v34 = vld [vmem:[%s3939_s3 + $0x78] sm:$0xff] }
0x1255   :  { %v3322_v35 = vpop.eup %3321  ;;  %3226 = vmatpush3.bf16.msra.mxu0 %v3223_v38 }
0x1256   :  { %v2032_v36 = vmul.f32 %v3322_v35, %v3318_v19  ;;  %3228 = vmatprep.subr.bf16.mxu0 %v3227_v41  ;;  %v2860_v19 = vld [vmem:[%s3939_s3 + $0x50] sm:$0xff]  ;;  %v3251_v35 = vpack.c.bf16 %v2865_v34, %v2864_v33 }
0x1258   :  { %3118 = vmatmul.mubr.msk.f32.vlgmr.msra.gmra.mrb[24].mxu1 %vm454_vm4, %v2032_v36  ;;  %v2855_v36 = vld [vmem:[%s3923_s5 + $0xc] ss:$0 sm:$0xff] }
0x1327   :  { %v2105_v42 = vpop.f32.mrb[14].mxu0 }
0x1328   :  { %v3114_v43 = vpop.f32.mrb[15].mxu0  ;;  %3124 = vmatprep.mubr.msk.f32.mxu0 %vm286_vm3, %v2105_v42 }
0x132b   :  { %v2181_v44 = vpop.f32.mrb[24].mxu1 }
0x132c   :  { %v3119_v45 = vpop.f32.mrb[25].mxu1  ;;  %3125 = vmatmul.mubr.msk.f32.vlgmr.msra.gmra.mrb[16].mxu0 %vm286_vm3, %v2181_v44 }
0x132d   :  { %3230 = vmatpush3.bf16.msra.mxu0 %v3227_v41  ;;  %3131 = vmatprep.mubr.msk.f32.mxu0 %vm286_vm3, %v1768_v4 }
0x132e   :  { %3240 = vmatprep.subr.bf16.mxu0 %v3239_v27 }
0x1334   :  { %3132 = vmatmul.mubr.msk.f32.vlgmr.msra.gmra.mrb[16].mxu0 %vm286_vm3, %v1844_v6  ;;  %v2853_v6 = vld [vmem:[%s3938_s14 + $0x38] sm:$0xff] }
0x1335   :  { %v3235_v7 = vpack.c.bf16 %v2853_v6, %v2852_v5  ;;  %3242 = vmatpush3.bf16.msra.mxu0 %v3239_v27 }
0x1407   :  { %v3133_v47 = vpop.f32.mrb[16].mxu0 }
0x1408   :  { %v2356_v48 = vadd.f32 %v3133_v47, %v2845_v46  ;;  %v2341_v54 = vpop.f32.mrb[17].mxu0 }
0x1409   :  { %v2355_v50 = vadd.f32 %v2845_v46, %v2341_v54 }
0x140a   :  { %v2358_v49 = vadd.f32 %v2356_v48, %v3724_v25 }
0x140b   :  { %v2357_v51 = vadd.f32 %v2355_v50, %v3722_v24  ;;  %v2850_v24 = vld [vmem:[%s3938_s14 + $0x20] sm:$0xff] }
0x140c   :  { %v2364_v52 = vsel %vm124_vm1, %v2358_v49, 0.0  ;;  %v3231_v4 = vpack.c.bf16 %v2851_v3, %v2850_v24 }
0x140d   :  { %2365 = vadd.xlane.f32.xlu0 %v2364_v52  ;;  %v2361_v53 = vsel %vm124_vm1, %v2357_v51, 0.0 }
0x140e   :  { %2362 = vadd.xlane.f32.xlu1 %v2361_v53  ;;  %3232 = vmatprep.subr.bf16.mxu1 %v3231_v4 }
0x140f   :  { %3234 = vmatpush3.bf16.msra.mxu1 %v3231_v4 }
0x1410   :  { %3236 = vmatprep.subr.bf16.mxu1 %v3235_v7 }
0x1413   :  { %3238 = vmatpush3.bf16.msra.mxu1 %v3235_v7 }
0x149a   :  { %v2366_v56 = vpop.xlane.xlu0 %2365 }
0x149b   :  { %v2368_v57 = vmul.f32 0.03125, %v2366_v56  ;;  %v2363_v59 = vpop.xlane.xlu1 %2362 }
0x149c   :  { %v2367_v61 = vmul.f32 0.03125, %v2363_v59 }
0x149d   :  { %v2370_v62 = vsub.f32 %v2358_v49, %v2368_v57 }
0x149e   :  { %v2369_v63 = vsub.f32 %v2357_v51, %v2367_v61  ;;  %v2867_v61 = vld [vmem:[%s3923_s5 + $0xd] ss:$0 sm:$0xff] }
0x149f   :  { %v2372_v0 = vmul.f32 %v2370_v62, %v2370_v62 }
0x14a0   :  { %v2371_v1 = vmul.f32 %v2369_v63, %v2369_v63 }
0x14a1   :  { %v2376_v2 = vsel %vm124_vm1, %v2372_v0, 0.0 }
0x14a2   :  { %2377 = vadd.xlane.f32.xlu1 %v2376_v2  ;;  %v2373_v25 = vsel %vm124_vm1, %v2371_v1, 0.0 }
0x14a3   :  { %2374 = vadd.xlane.f32.xlu0 %v2373_v25 }
0x152f   :  { %v2378_v8 = vpop.xlane.xlu1 %2377 }
0x1530   :  { %v2380_v9 = vmul.f32 0.03125, %v2378_v8  ;;  %v2375_v10 = vpop.xlane.xlu0 %2374 }
0x1531   :  { %v2379_v11 = vmul.f32 0.03125, %v2375_v10 }
0x1532   :  { %v2382_v12 = vadd.f32 1e-12, %v2380_v9 }
0x1533   :  { %v2381_v14 = vadd.f32 1e-12, %v2379_v11 }
0x1534   :  { %3323 = vrsqrt.f32 %v2382_v12 }
0x1535   :  { %3325 = vrsqrt.f32 %v2381_v14 }
0x153e   :  { %v3324_v58 = vpop.eup %3323 }
0x153f   :  { %v3326_v16 = vpop.eup %3325  ;;  %v2386_v17 = vmul.f32 %v3324_v58, %v2370_v62  ;;  %v2645_v58 = vld [vmem:[%s3940_s19] sm:$0xff] }
0x1540   :  { %v2385_v18 = vmul.f32 %v3326_v16, %v2369_v63 }
0x1541   :  { %v2392_v21 = vmul.f32 %v2848_v15, %v2386_v17  ;;  %v2647_v17 = vld [vmem:[%s3940_s19 + $0x10] sm:$0xff] }
0x1542   :  { %v2391_v22 = vmul.f32 %v2848_v15, %v2385_v18  ;;  %v2646_v15 = vld [vmem:[%s3940_s19 + $0x8] sm:$0xff]  ;;  %v2648_v18 = vld [vmem:[%s3940_s19 + $0x18] sm:$0xff] }
0x1543   :  { %v2398_v60 = vadd.f32 %v2849_v20, %v2392_v21  ;;  %v3256_v16 = vpack.c.bf16 %v2646_v15, %v2645_v58  ;;  %v3259_v21 = vpack.c.bf16 %v2648_v18, %v2647_v17 }
0x1544   :  { %v2397_v13 = vadd.f32 %v2849_v20, %v2391_v22  ;;  %v3362_v20 = vmov 0.0|0.0  }
0x1545   :  { %3255 = vmatprep.subr.bf16.mxu1 %v3362_v20 }
0x1546   :  { %3142 = vmatprep.mubr.msk.f32.mxu1 %vm124_vm1, %v2397_v13 }
0x1547   :  { %3143 = vmatmul.mubr.msk.f32.vlgmr.msra.gmra.mrb[26].mxu1 %vm124_vm1, %v2398_v60 }
0x1548   :  { %3172 = vmatprep.mubr.msk.f32.mxu1 %vm3355_vm2, %v3354_v55  ;;  %v3243_v55 = vpack.c.bf16 %v2861_v29, %v2860_v19  ;;  %3257 = vmatpush3.bf16.msra.mxu1 %v3256_v16  ;;  %v2872_v29 = vld [vmem:[%s3923_s5 + $0xe] ss:$0 sm:$0xff] }
0x1549   :  { %3258 = vmatprep.subr.bf16.mxu1 %v3362_v20 }
0x154a   :  { %3244 = vmatprep.subr.bf16.mxu0 %v3243_v55 }
0x154b   :  { %3246 = vmatpush3.bf16.msra.mxu0 %v3243_v55 }
0x154c   :  { %3248 = vmatprep.subr.bf16.mxu0 %v3247_v32  ;;  %3260 = vmatpush3.bf16.msra.mxu1 %v3259_v21 }
0x154f   :  { %3250 = vmatpush3.bf16.msra.mxu0 %v3247_v32  ;;  %v2873_v32 = vld [vmem:[%s3923_s5 + $0xf] ss:$0 sm:$0xff] }
0x1550   :  { %3252 = vmatprep.subr.bf16.mxu0 %v3251_v35 }
0x1553   :  { %3254 = vmatpush3.bf16.msra.mxu0 %v3251_v35 }
0x161a   :  { %v3144_v37 = vpop.f32.mrb[26].mxu1 }
0x161b   :  { %v2487_v30 = vadd.f32 %v3144_v37, %v2855_v36  ;;  %v2481_v38 = vpop.f32.mrb[27].mxu1 }
0x161c   :  { %v2482_v39 = vadd.f32 %v2855_v36, %v2481_v38  ;;  %v2874_v38 = vld [vmem:[%s3922_s4 + $0x2] ss:$0 sm:$0xff] }
0x161d   :  { %v2491_v40 = vmul.f32 %v2487_v30, %v2487_v30 }
0x161e   :  { %v2490_v41 = vmul.f32 %v2482_v39, %v2482_v39 }
0x161f   :  { %v2493_v42 = vmul.f32 %v2491_v40, %v2487_v30 }
0x1620   :  { %v2492_v43 = vmul.f32 %v2490_v41, %v2482_v39 }
0x1621   :  { %v2495_v44 = vmul.f32 0.044715, %v2493_v42 }
0x1622   :  { %v2494_v45 = vmul.f32 0.044715, %v2492_v43 }
0x1623   :  { %v2497_v46 = vadd.f32 %v2495_v44, %v2487_v30 }
0x1624   :  { %v2496_v47 = vadd.f32 %v2494_v45, %v2482_v39 }
0x1625   :  { %v2499_v48 = vmul.f32 0.7978846, %v2497_v46 }
0x1626   :  { %v2498_v54 = vmul.f32 0.7978846, %v2496_v47 }
0x1627   :  { %3327 = vtanh.f32 %v2499_v48 }
0x1628   :  { %3329 = vtanh.f32 %v2498_v54 }
0x1631   :  { %v3328_v50 = vpop.eup %3327 }
0x1632   :  { %v3330_v49 = vpop.eup %3329  ;;  %v2503_v51 = vadd.f32 1.0, %v3328_v50 }
0x1633   :  { %v2502_v52 = vadd.f32 1.0, %v3330_v49 }
0x1634   :  { %v2505_v53 = vmul.f32 0.5, %v2503_v51 }
0x1635   :  { %v2504_v56 = vmul.f32 0.5, %v2502_v52 }
0x1636   :  { %v2507_v59 = vmul.f32 %v2505_v53, %v2487_v30 }
0x1637   :  { %v2506_v57 = vmul.f32 %v2504_v56, %v2482_v39 }
0x1639   :  { %3161 = vmatprep.mubr.msk.f32.mxu0 %vm1300_vm5, %v2506_v57 }
0x163a   :  { %3162 = vmatmul.mubr.msk.f32.vlgmr.msra.gmra.mrb[18].mxu0 %vm1300_vm5, %v2507_v59 }
0x170d   :  { %v3163_v62 = vpop.f32.mrb[18].mxu0 }
0x170e   :  { %v2600_v63 = vadd.f32 %v3163_v62, %v2867_v61  ;;  %v2594_v0 = vpop.f32.mrb[19].mxu0 }
0x170f   :  { %v2595_v1 = vadd.f32 %v2867_v61, %v2594_v0 }
0x1710   :  { %v2604_v2 = vadd.f32 %v2600_v63, %v2398_v60 }
0x1711   :  { %v2603_v25 = vadd.f32 %v2595_v1, %v2397_v13 }
0x1712   :  { %v2610_v24 = vsel %vm124_vm1, %v2604_v2, 0.0 }
0x1713   :  { %2611 = vadd.xlane.f32.xlu0 %v2610_v24  ;;  %v2607_v3 = vsel %vm124_vm1, %v2603_v25, 0.0 }
0x1714   :  { %2608 = vadd.xlane.f32.xlu1 %v2607_v3 }
0x17a0   :  { %v2612_v4 = vpop.xlane.xlu0 %2611 }
0x17a1   :  { %v2614_v5 = vmul.f32 0.03125, %v2612_v4  ;;  %v2609_v6 = vpop.xlane.xlu1 %2608 }
0x17a2   :  { %v2613_v7 = vmul.f32 0.03125, %v2609_v6 }
0x17a3   :  { %v2616_v8 = vsub.f32 %v2604_v2, %v2614_v5 }
0x17a4   :  { %v2615_v9 = vsub.f32 %v2603_v25, %v2613_v7 }
0x17a5   :  { %v2618_v10 = vmul.f32 %v2616_v8, %v2616_v8 }
0x17a6   :  { %v2617_v11 = vmul.f32 %v2615_v9, %v2615_v9 }
0x17a7   :  { %v2622_v12 = vsel %vm124_vm1, %v2618_v10, 0.0 }
0x17a8   :  { %2623 = vadd.xlane.f32.xlu0 %v2622_v12  ;;  %v2619_v14 = vsel %vm124_vm1, %v2617_v11, 0.0 }
0x17a9   :  { %2620 = vadd.xlane.f32.xlu1 %v2619_v14 }
0x1835   :  { %v2624_v22 = vpop.xlane.xlu0 %2623 }
0x1836   :  { %v2626_v13 = vmul.f32 0.03125, %v2624_v22  ;;  %v2621_v60 = vpop.xlane.xlu1 %2620 }
0x1837   :  { %v2625_v23 = vmul.f32 0.03125, %v2621_v60 }
0x1838   :  { %v2628_v26 = vadd.f32 1e-12, %v2626_v13 }
0x1839   :  { %v2627_v27 = vadd.f32 1e-12, %v2625_v23 }
0x183a   :  { %3331 = vrsqrt.f32 %v2628_v26 }
0x183b   :  { %3333 = vrsqrt.f32 %v2627_v27 }
0x1844   :  { %v3332_v19 = vpop.eup %3331 }
0x1845   :  { %v3334_v55 = vpop.eup %3333  ;;  %v2632_v28 = vmul.f32 %v3332_v19, %v2616_v8 }
0x1846   :  { %v2631_v31 = vmul.f32 %v3334_v55, %v2615_v9 }
0x1847   :  { %v2638_v33 = vmul.f32 %v2872_v29, %v2632_v28 }
0x1848   :  { %v2637_v34 = vmul.f32 %v2872_v29, %v2631_v31 }
0x1849   :  { %v2644_v35 = vadd.f32 %v2873_v32, %v2638_v33 }
0x184a   :  { %v2643_v36 = vadd.f32 %v2873_v32, %v2637_v34 }
0x184b   :  { %v2656_v37 = vrot.slane %v2644_v35, 7 }
0x184d   :  { %v2658_v30 = vsel %vm2657_vm6, %v2656_v37, %v2643_v36 }
0x184e   :  { %3173 = vmatmul.mubr.msk.f32.vlgmr.msra.gmra.mrb[28].mxu1 %vm124_vm1, %v2658_v30 }
0x1921   :  { %v2727_v39 = vpop.f32.mrb[28].mxu1 }
0x1922   :  { %v2728_v40 = vadd.f32 %v2874_v38, %v2727_v39  ;;  %v3174_v41 = vpop.f32.mrb[29].mxu1 }
0x1924   :  { %v2732_v42 = vsel %vm2731_vm7, %v2728_v40, -inf  ;;  %2743 = vst.msk [vmem:[%s3941_s1] sm:$0x3] %vm2731_vm7, %v2728_v40 }
0x1925   :  { %2733 = vmax.xlane.f32.xlu0 %v2732_v42 }
0x19b2   :  { %v2734_v43 = vpop.xlane.xlu0 %2733 }
0x19b3   :  { %v2735_v44 = vsub.f32 %v2728_v40, %v2734_v43 }
0x19b5   :  { %v2736_v45 = vmul.f32 1.442695, %v2735_v44 }
0x19b7   :  { %3335 = vpow2.f32 %v2736_v45 }
0x19c1   :  { %v3336_v46 = vpop.eup %3335 }
0x19c2   :  { %v2738_v47 = vsel %vm2731_vm7, %v3336_v46, 0.0 }
0x19c3   :  { %2739 = vadd.xlane.f32.xlu1 %v2738_v47 }
0x1a50   :  { %v2740_v48 = vpop.xlane.xlu1 %2739 }
0x1a51   :  { %3337 = vrcp.f32 %v2740_v48 }
0x1a5b   :  { %v3338_v54 = vpop.eup %3337 }
0x1a5c   :  { %v2742_v50 = vmul.f32 %v3338_v54, %v3336_v46 }
0x1a5e   :  { %2876 = vst.msk [vmem:[%s3941_s1 + $0x2] sm:$0x3] %vm2731_vm7, %v2742_v50 }
0x1a5f   :  { %2750 = vsyncpa [#allocation4], 1 }

</bundles_post_ra>
